<compile_context>
chip_gen: v5e
topology: v5e:2x2
jax: 0.10.0
libtpu: 0.0.40
codegen_flags: <defaults>
</compile_context>

<pallas_src>
import functools

import jax
import jax.numpy as jnp
from jax import lax
from jax.experimental import pallas as pl
from jax.experimental.pallas import tpu as pltpu


def _gelu_exact(x):
    """Exact (erf-based) GELU matching torch.nn.GELU(), built only from ops
    with guaranteed Mosaic lowerings (A&S 7.1.26 erf approx, |err| < 1.5e-7)."""
    a1, a2, a3, a4, a5 = (0.254829592, -0.284496736, 1.421413741,
                          -1.453152027, 1.061405429)
    pc = 0.3275911
    z = x * 0.7071067811865476                 # x / sqrt(2)
    sgn = jnp.where(z >= 0.0, 1.0, -1.0)
    az = jnp.abs(z)
    t = 1.0 / (1.0 + pc * az)
    poly = ((((a5 * t + a4) * t + a3) * t + a2) * t + a1) * t
    erf = sgn * (1.0 - poly * jnp.exp(-az * az))
    return 0.5 * x * (1.0 + erf)


def transformer_block_kernel(
    x_ref,            # (bb, N, C) f32
    ln1_g_ref,        # (1, C)     f32
    ln1_b_ref,        # (1, C)     f32
    wqkv_t_ref,       # (3C, C)    bf16  (PyTorch [out, in]; Q rows pre-scaled)
    bqk_ref,          # (2C, 1)    f32   (Q rows pre-scaled; V bias folded out)
    wproj_ref,        # (C, C)     bf16  ([in, out])
    bproj_ref,        # (1, C)     f32   (includes b_v @ Wproj)
    rel_bias_t_ref,   # (H, N, N)  bf16  [head, key, query]
    ln2_g_ref,        # (1, C)     f32
    ln2_b_ref,        # (1, C)     f32
    w1_ref,           # (C, 4C)    bf16
    b1_ref,           # (1, 4C)    f32
    w2_ref,           # (4C, C)    bf16
    b2_ref,           # (1, C)     f32
    gates_ref,        # (2,)       f32 SMEM  [gate1, gate2]
    o_ref,            # (bb, N, C) f32
    qkv_scr,          # (3C, N)    qkv_dtype VMEM
    ctx_scr,          # (C, N)     f32 VMEM
    attn_scr,         # (bb*N, C)  f32 VMEM
    *,
    num_heads,
    head_dim,
    batch_block,
    seq_len,
    qkv_dtype,
):
    eps = 1e-5
    f32, bf16 = jnp.float32, jnp.bfloat16
    N, bb = seq_len, batch_block
    C = num_heads * head_dim
    R = bb * N

    # Flatten the batch block into rows (leading-dim merge only; free since
    # N % 8 == 0 whenever bb > 1) so LN / MLP matmuls see bb*N rows.
    x = x_ref[...].reshape(R, C)

    # ---------------- LayerNorm 1 (f32) ----------------
    mu = jnp.mean(x, axis=-1, keepdims=True)
    xc = x - mu
    var = jnp.mean(xc * xc, axis=-1, keepdims=True)
    h = xc * lax.rsqrt(var + eps) * ln1_g_ref[...] + ln1_b_ref[...]      # (R, C)

    # ------- attention, one batch element at a time (bb, H small & static) ----
    for b in range(bb):
        h_b = h[b * N:(b + 1) * N, :].astype(bf16)                       # (N, C)

        # (3C, N) = Wqkv @ h_b^T  -- transpose-free (contract dim 1 of both).
        qkv_t = lax.dot_general(
            wqkv_t_ref[...], h_b,
            dimension_numbers=(((1,), (1,)), ((), ())),
            preferred_element_type=f32)                                  # (3C, N)

        # Bias only on Q (pre-scaled) and K rows; V bias was folded into bproj.
        qkv_scr[0:2 * C, :] = (qkv_t[0:2 * C, :] + bqk_ref[...]).astype(qkv_dtype)
        qkv_scr[2 * C:3 * C, :] = qkv_t[2 * C:3 * C, :].astype(qkv_dtype)

        for hh in range(num_heads):
            r0 = hh * head_dim
            qT = qkv_scr[r0:r0 + head_dim, :].astype(bf16)               # (D, Nq)
            kT = qkv_scr[C + r0:C + r0 + head_dim, :].astype(bf16)       # (D, Nk)
            vT = qkv_scr[2 * C + r0:2 * C + r0 + head_dim, :].astype(bf16)

            # Transposed scores s_t[key, query]; softmax along sublanes so all
            # softmax statistics are lane-aligned (1, Nq) rows.
            s_t = lax.dot_general(kT, qT,
                                  dimension_numbers=(((0,), (0,)), ((), ())),
                                  preferred_element_type=f32)            # (Nk, Nq)
            s_t = s_t + rel_bias_t_ref[hh].astype(f32)
            m = jnp.max(s_t, axis=0, keepdims=True)                      # (1, Nq)
            pexp = jnp.exp(s_t - m)                                      # (Nk, Nq)
            denom = jnp.sum(pexp, axis=0, keepdims=True)                 # (1, Nq)

            out_h = lax.dot_general(vT, pexp.astype(bf16),
                                    dimension_numbers=(((1,), (0,)), ((), ())),
                                    preferred_element_type=f32)          # (D, Nq)
            # Normalize on the EUP; aligned sublane-slice store into (C, N) ctx.
            ctx_scr[r0:r0 + head_dim, :] = (
                out_h * pl.reciprocal(denom, approx=True))

        # Output projection: (N, C) = ctx^T @ Wproj (contract dim 0 of both).
        attn_b = lax.dot_general(ctx_scr[...].astype(bf16), wproj_ref[...],
                                 dimension_numbers=(((0,), (0,)), ((), ())),
                                 preferred_element_type=f32)             # (N, C)
        attn_scr[b * N:(b + 1) * N, :] = attn_b + bproj_ref[...]

    g1 = gates_ref[0]
    g2 = gates_ref[1]
    x1 = x + g1 * attn_scr[...]                                          # (R, C)

    # ---------------- LayerNorm 2 (f32) ----------------
    mu2 = jnp.mean(x1, axis=-1, keepdims=True)
    xc2 = x1 - mu2
    var2 = jnp.mean(xc2 * xc2, axis=-1, keepdims=True)
    h2 = xc2 * lax.rsqrt(var2 + eps) * ln2_g_ref[...] + ln2_b_ref[...]

    # ---------------- MLP (Linear -> exact GELU -> Linear) ----------------
    m1 = jnp.dot(h2.astype(bf16), w1_ref[...],
                 preferred_element_type=f32) + b1_ref[...]
    m1 = _gelu_exact(m1)
    m2 = jnp.dot(m1.astype(bf16), w2_ref[...],
                 preferred_element_type=f32) + b2_ref[...]

    o_ref[...] = (x1 + g2 * m2).reshape(bb, N, C)


def _pick_batch_block(B, N):
    """Pack several batch elements per grid step at small shapes (amortizes the
    ~0.35us/step overhead and feeds more rows to the MXU)."""
    if N % 8 != 0:
        return 1
    best = 1
    for cand in range(1, B + 1):
        if B % cand == 0 and cand * N <= 256:
            best = cand
    return best


def _physical_vmem_bytes():
    try:
        return int(pltpu.get_tpu_info().vmem_capacity_bytes)
    except Exception:
        return 64 * 2**20            # conservative (v7x-sized) fallback


def _vmem_limit_bytes(bb, N, C, H, qkv_itemsize):
    bf16, f32 = 2, 4
    weights = (3 * C * C + C * C + 4 * C * C + 4 * C * C) * bf16    # Buffered(1)
    biases = (2 * C + C + 4 * C + C + 4 * C) * f32                  # Buffered(1)
    rel = H * N * N * bf16                                          # Buffered(1)
    io = 2 * 2 * (bb * N * C) * f32                                 # x / out, double-buffered
    scratch = 3 * C * N * qkv_itemsize + C * N * f32 + bb * N * C * f32
    acts = (3 * C * N + 2 * N * N + bb * N * 4 * C + 4 * bb * N * C) * f32
    est = weights + biases + rel + io + scratch + acts
    cap = _physical_vmem_bytes() - 16 * 2**20
    return int(min(max(32 * 2**20, 2 * est), cap))


def prepare_params(params, dim, num_heads):
    """One-time host-side transforms: bf16 matmul weights; Wqkv transposed to
    [out, in] with the 1/sqrt(head_dim) scale folded into the Q rows (and Q
    bias); V bias folded through the projection into bproj."""
    C = dim
    head_dim = C // num_heads
    scale = head_dim ** (-0.5)

    wqkv = params["wqkv"].astype(jnp.float32)              # (C, 3C)  [in, out]
    bqkv = params["bqkv"].reshape(3 * C).astype(jnp.float32)
    wproj = params["wproj"].astype(jnp.float32)            # (C, C)   [in, out]

    row_scale = jnp.concatenate(
        [jnp.full((C,), scale, jnp.float32), jnp.ones((2 * C,), jnp.float32)])
    wqkv_t = (wqkv.T * row_scale[:, None]).astype(jnp.bfloat16)           # (3C, C)
    bqk = (bqkv[:2 * C] * row_scale[:2 * C]).reshape(2 * C, 1).astype(jnp.float32)
    b_v = bqkv[2 * C:]
    bproj = (params["bproj"].reshape(1, C).astype(jnp.float32)
             + (b_v @ wproj).reshape(1, C))

    return {
        "ln1_g": params["ln1_g"].reshape(1, C).astype(jnp.float32),
        "ln1_b": params["ln1_b"].reshape(1, C).astype(jnp.float32),
        "wqkv_t": wqkv_t,
        "bqk": bqk,
        "wproj": wproj.astype(jnp.bfloat16),
        "bproj": bproj,
        "rel_pos_bias": params["rel_pos_bias"].astype(jnp.float32),
        "ln2_g": params["ln2_g"].reshape(1, C).astype(jnp.float32),
        "ln2_b": params["ln2_b"].reshape(1, C).astype(jnp.float32),
        "w1": params["w1"].astype(jnp.bfloat16),
        "b1": params["b1"].reshape(1, 4 * C).astype(jnp.float32),
        "w2": params["w2"].astype(jnp.bfloat16),
        "b2": params["b2"].reshape(1, C).astype(jnp.float32),
        "gates": jnp.stack([params["gate1"].reshape(()),
                            params["gate2"].reshape(())]).astype(jnp.float32),
    }


def transformer_block(x, prepped, *, num_heads, max_seq_len):
    """x: (B, N, C) float32; prepped: output of prepare_params."""
    B, N, C = x.shape
    head_dim = C // num_heads
    assert C == num_heads * head_dim
    assert N <= max_seq_len, "relative-position table only covers N <= max_seq_len"

    bb = _pick_batch_block(B, N)
    grid = (B // bb,)

    # Relative-position bias gathered on the host and shipped transposed
    # ([head, key, query]) so the in-kernel softmax reduces along sublanes.
    positions = jnp.arange(N)[:, None] - jnp.arange(N)[None, :]           # [q, k]
    rel = prepped["rel_pos_bias"][positions + max_seq_len - 1]            # (q, k, H)
    rel_t = jnp.transpose(rel, (2, 1, 0)).astype(jnp.bfloat16)            # (H, k, q)

    # bf16 QKV scratch only when head slices stay 16-row (bf16 packing) aligned.
    qkv_dtype = jnp.bfloat16 if head_dim % 16 == 0 else jnp.float32

    kernel = functools.partial(
        transformer_block_kernel, num_heads=num_heads, head_dim=head_dim,
        batch_block=bb, seq_len=N, qkv_dtype=qkv_dtype)

    def _const_spec(shape):
        zeros = (0,) * len(shape)
        index_map = lambda i, _z=zeros: _z
        try:
            # Grid-invariant operand: single-buffered (fetched once, stays resident).
            return pl.BlockSpec(shape, index_map, pipeline_mode=pl.Buffered(1))
        except (AttributeError, TypeError, ValueError):
            return pl.BlockSpec(shape, index_map)

    grid_spec = pltpu.PrefetchScalarGridSpec(
        num_scalar_prefetch=0,
        grid=grid,
        in_specs=[
            pl.BlockSpec((bb, N, C), lambda i: (i, 0, 0)),                # x
            _const_spec((1, C)),                                          # ln1 gamma
            _const_spec((1, C)),                                          # ln1 beta
            _const_spec((3 * C, C)),                                      # Wqkv^T (bf16)
            _const_spec((2 * C, 1)),                                      # bq|bk column
            _const_spec((C, C)),                                          # Wproj (bf16)
            _const_spec((1, C)),                                          # bproj (+ bv@Wproj)
            _const_spec((num_heads, N, N)),                               # rel bias^T (bf16)
            _const_spec((1, C)),                                          # ln2 gamma
            _const_spec((1, C)),                                          # ln2 beta
            _const_spec((C, 4 * C)),                                      # W1 (bf16)
            _const_spec((1, 4 * C)),                                      # b1
            _const_spec((4 * C, C)),                                      # W2 (bf16)
            _const_spec((1, C)),                                          # b2
            pl.BlockSpec(memory_space=pltpu.MemorySpace.SMEM),            # gates
        ],
        out_specs=pl.BlockSpec((bb, N, C), lambda i: (i, 0, 0)),
        scratch_shapes=[
            pltpu.VMEM((3 * C, N), qkv_dtype),    # qkv (transposed)
            pltpu.VMEM((C, N), jnp.float32),      # per-head context (transposed)
            pltpu.VMEM((bb * N, C), jnp.float32), # attention branch output
        ],
    )

    return pl.pallas_call(
        kernel,
        out_shape=jax.ShapeDtypeStruct((B, N, C), jnp.float32),
        grid_spec=grid_spec,
        compiler_params=pltpu.CompilerParams(
            dimension_semantics=("parallel",),
            vmem_limit_bytes=_vmem_limit_bytes(
                bb, N, C, num_heads, jnp.dtype(qkv_dtype).itemsize),
        ),
    )(
        x,
        prepped["ln1_g"], prepped["ln1_b"],
        prepped["wqkv_t"], prepped["bqk"],
        prepped["wproj"], prepped["bproj"],
        rel_t,
        prepped["ln2_g"], prepped["ln2_b"],
        prepped["w1"], prepped["b1"],
        prepped["w2"], prepped["b2"],
        prepped["gates"],
    )


def reference_transformer_block(x, params, *, num_heads, max_seq_len):
    """Pure-JAX f32 reference matching the PyTorch module (inference mode)."""
    B, N, C = x.shape
    D = C // num_heads
    scale = D ** (-0.5)

    def layer_norm(z, g, b):
        mu = jnp.mean(z, axis=-1, keepdims=True)
        var = jnp.mean((z - mu) ** 2, axis=-1, keepdims=True)
        return (z - mu) / jnp.sqrt(var + 1e-5) * g + b

    h = layer_norm(x, params["ln1_g"], params["ln1_b"])
    qkv = h @ params["wqkv"] + params["bqkv"]                      # (B, N, 3C)
    qkv = qkv.reshape(B, N, 3, num_heads, D).transpose(2, 0, 3, 1, 4)
    q, k, v = qkv[0], qkv[1], qkv[2]
    q = q * scale
    attn = jnp.einsum("bhnd,bhmd->bhnm", q, k)
    positions = jnp.arange(N)[:, None] - jnp.arange(N)[None, :]
    rel = params["rel_pos_bias"][positions + max_seq_len - 1]      # (N, N, H)
    attn = attn + jnp.transpose(rel, (2, 0, 1))[None]
    attn = jax.nn.softmax(attn.astype(jnp.float32), axis=-1)
    ctx = jnp.einsum("bhnm,bhmd->bhnd", attn, v)
    ctx = ctx.transpose(0, 2, 1, 3).reshape(B, N, C)
    attn_out = ctx @ params["wproj"] + params["bproj"]
    x1 = x + params["gate1"] * attn_out
    h2 = layer_norm(x1, params["ln2_g"], params["ln2_b"])
    m = jax.nn.gelu(h2 @ params["w1"] + params["b1"], approximate=False)
    m = m @ params["w2"] + params["b2"]
    return x1 + params["gate2"] * m


def init_params(key, dim, num_heads, max_seq_len):
    ks = jax.random.split(key, 12)
    std = 0.02
    return {
        "ln1_g": (1.0 + std * jax.random.normal(ks[0], (1, dim))).astype(jnp.float32),
        "ln1_b": (std * jax.random.normal(ks[1], (1, dim))).astype(jnp.float32),
        "ln2_g": (1.0 + std * jax.random.normal(ks[2], (1, dim))).astype(jnp.float32),
        "ln2_b": (std * jax.random.normal(ks[3], (1, dim))).astype(jnp.float32),
        # Linear weights stored as (in, out); prepare_params transposes / casts.
        "wqkv": (std * jax.random.normal(ks[4], (dim, 3 * dim))).astype(jnp.float32),
        "bqkv": (std * jax.random.normal(ks[5], (1, 3 * dim))).astype(jnp.float32),
        "wproj": (std * jax.random.normal(ks[6], (dim, dim))).astype(jnp.float32),
        "bproj": (std * jax.random.normal(ks[7], (1, dim))).astype(jnp.float32),
        "rel_pos_bias": (std * jax.random.normal(
            ks[8], (2 * max_seq_len - 1, num_heads))).astype(jnp.float32),
        "w1": (std * jax.random.normal(ks[9], (dim, 4 * dim))).astype(jnp.float32),
        "b1": (std * jax.random.normal(ks[10], (1, 4 * dim))).astype(jnp.float32),
        "w2": (std * jax.random.normal(ks[11], (4 * dim, dim))).astype(jnp.float32),
        "b2": jnp.zeros((1, dim), jnp.float32),
        "gate1": jnp.ones((), jnp.float32),
        "gate2": jnp.ones((), jnp.float32),
    }


if __name__ == "__main__":
    B, N, dim = 2, 8, 32
    num_heads = 4
    max_seq_len = 64

    key = jax.random.PRNGKey(0)
    kx, kp = jax.random.split(key)
    x = jax.random.normal(kx, (B, N, dim), dtype=jnp.float32)

    raw_params = init_params(kp, dim, num_heads, max_seq_len)
    prepped = prepare_params(raw_params, dim, num_heads)

    out = transformer_block(x, prepped, num_heads=num_heads, max_seq_len=max_seq_len)
    out = jax.block_until_ready(out)

    ref = reference_transformer_block(x, raw_params, num_heads=num_heads,
                                      max_seq_len=max_seq_len)
    ref = jax.block_until_ready(ref)

    assert out.shape == (B, N, dim)
    assert bool(jnp.all(jnp.isfinite(out)))
    max_err = float(jnp.max(jnp.abs(out - ref)))
    # bf16 matmul operands + approx reciprocal: expect ~1e-3; assert with headroom.
    assert max_err < 2e-2, f"max abs error vs f32 reference: {max_err}"
    print("KERNEL_OK")
</pallas_src>

<mosaic_0001>
module attributes {stable_mosaic.version = 11 : i64} {
  func.func @transformer_block_kernel(%arg0: i32, %arg1: memref<2x8x32xf32, #tpu.memory_space<vmem>>, %arg2: memref<1x32xf32, #tpu.memory_space<vmem>>, %arg3: memref<1x32xf32, #tpu.memory_space<vmem>>, %arg4: memref<96x32xbf16, #tpu.memory_space<vmem>>, %arg5: memref<64x1xf32, #tpu.memory_space<vmem>>, %arg6: memref<32x32xbf16, #tpu.memory_space<vmem>>, %arg7: memref<1x32xf32, #tpu.memory_space<vmem>>, %arg8: memref<4x8x8xbf16, #tpu.memory_space<vmem>>, %arg9: memref<1x32xf32, #tpu.memory_space<vmem>>, %arg10: memref<1x32xf32, #tpu.memory_space<vmem>>, %arg11: memref<32x128xbf16, #tpu.memory_space<vmem>>, %arg12: memref<1x128xf32, #tpu.memory_space<vmem>>, %arg13: memref<128x32xbf16, #tpu.memory_space<vmem>>, %arg14: memref<1x32xf32, #tpu.memory_space<vmem>>, %arg15: memref<2xf32, #tpu.memory_space<smem>>, %arg16: memref<2x8x32xf32, #tpu.memory_space<vmem>>, %arg17: memref<96x8xf32, #tpu.memory_space<vmem>>, %arg18: memref<32x8xf32, #tpu.memory_space<vmem>>, %arg19: memref<16x32xf32, #tpu.memory_space<vmem>>) attributes {dimension_semantics = [#tpu.dimension_semantics<parallel>], iteration_bounds = array<i64: 1>, scalar_prefetch = 0 : i64, scratch_operands = 3 : i64, tpu.core_type = #tpu.core_type<tc>, window_params = [{transform_indices = @transform_0, window_bounds = array<i64: 2, 8, 32>}, {pipeline_mode = #tpu.pipeline_mode<synchronous>, transform_indices = @transform_1, window_bounds = array<i64: 1, 32>}, {pipeline_mode = #tpu.pipeline_mode<synchronous>, transform_indices = @transform_2, window_bounds = array<i64: 1, 32>}, {pipeline_mode = #tpu.pipeline_mode<synchronous>, transform_indices = @transform_3, window_bounds = array<i64: 96, 32>}, {pipeline_mode = #tpu.pipeline_mode<synchronous>, transform_indices = @transform_4, window_bounds = array<i64: 64, 1>}, {pipeline_mode = #tpu.pipeline_mode<synchronous>, transform_indices = @transform_5, window_bounds = array<i64: 32, 32>}, {pipeline_mode = #tpu.pipeline_mode<synchronous>, transform_indices = @transform_6, window_bounds = array<i64: 1, 32>}, {pipeline_mode = #tpu.pipeline_mode<synchronous>, transform_indices = @transform_7, window_bounds = array<i64: 4, 8, 8>}, {pipeline_mode = #tpu.pipeline_mode<synchronous>, transform_indices = @transform_8, window_bounds = array<i64: 1, 32>}, {pipeline_mode = #tpu.pipeline_mode<synchronous>, transform_indices = @transform_9, window_bounds = array<i64: 1, 32>}, {pipeline_mode = #tpu.pipeline_mode<synchronous>, transform_indices = @transform_10, window_bounds = array<i64: 32, 128>}, {pipeline_mode = #tpu.pipeline_mode<synchronous>, transform_indices = @transform_11, window_bounds = array<i64: 1, 128>}, {pipeline_mode = #tpu.pipeline_mode<synchronous>, transform_indices = @transform_12, window_bounds = array<i64: 128, 32>}, {pipeline_mode = #tpu.pipeline_mode<synchronous>, transform_indices = @transform_13, window_bounds = array<i64: 1, 32>}, {transform_indices = @transform_14, window_bounds = array<i64: 2>}, {transform_indices = @transform_15, window_bounds = array<i64: 2, 8, 32>}]} {
    %c0 = arith.constant 0 : index
    %c0_0 = arith.constant 0 : index
    %c0_1 = arith.constant 0 : index
    %0 = vector.load %arg1[%c0, %c0_0, %c0_1] : memref<2x8x32xf32, #tpu.memory_space<vmem>>, vector<2x8x32xf32>
    %1 = vector.shape_cast %0 : vector<2x8x32xf32> to vector<16x32xf32>
    %cst = arith.constant dense<0.000000e+00> : vector<16xf32>
    %2 = vector.multi_reduction <add>, %1, %cst [1] : vector<16x32xf32> to vector<16xf32>
    %3 = vector.shape_cast %2 : vector<16xf32> to vector<16x1xf32>
    %cst_2 = arith.constant 3.200000e+01 : f32
    %4 = vector.broadcast %cst_2 : f32 to vector<16x1xf32>
    %5 = arith.divf %3, %4 : vector<16x1xf32>
    %6 = vector.broadcast %5 : vector<16x1xf32> to vector<16x32xf32>
    %7 = arith.subf %1, %6 : vector<16x32xf32>
    %8 = arith.mulf %7, %7 : vector<16x32xf32>
    %cst_3 = arith.constant dense<0.000000e+00> : vector<16xf32>
    %9 = vector.multi_reduction <add>, %8, %cst_3 [1] : vector<16x32xf32> to vector<16xf32>
    %10 = vector.shape_cast %9 : vector<16xf32> to vector<16x1xf32>
    %cst_4 = arith.constant 3.200000e+01 : f32
    %11 = vector.broadcast %cst_4 : f32 to vector<16x1xf32>
    %12 = arith.divf %10, %11 : vector<16x1xf32>
    %cst_5 = arith.constant 9.99999974E-6 : f32
    %13 = vector.broadcast %cst_5 : f32 to vector<16x1xf32>
    %14 = arith.addf %12, %13 : vector<16x1xf32>
    %15 = math.rsqrt %14 : vector<16x1xf32>
    %16 = vector.broadcast %15 : vector<16x1xf32> to vector<16x32xf32>
    %17 = arith.mulf %7, %16 : vector<16x32xf32>
    %c0_6 = arith.constant 0 : index
    %c0_7 = arith.constant 0 : index
    %18 = vector.load %arg2[%c0_6, %c0_7] : memref<1x32xf32, #tpu.memory_space<vmem>>, vector<1x32xf32>
    %19 = vector.broadcast %18 : vector<1x32xf32> to vector<16x32xf32>
    %20 = arith.mulf %17, %19 : vector<16x32xf32>
    %c0_8 = arith.constant 0 : index
    %c0_9 = arith.constant 0 : index
    %21 = vector.load %arg3[%c0_8, %c0_9] : memref<1x32xf32, #tpu.memory_space<vmem>>, vector<1x32xf32>
    %22 = vector.broadcast %21 : vector<1x32xf32> to vector<16x32xf32>
    %23 = arith.addf %20, %22 : vector<16x32xf32>
    %24 = vector.extract_strided_slice %23 {offsets = [0, 0], sizes = [8, 32], strides = [1, 1]} : vector<16x32xf32> to vector<8x32xf32>
    %25 = arith.truncf %24 : vector<8x32xf32> to vector<8x32xbf16>
    %c0_10 = arith.constant 0 : index
    %c0_11 = arith.constant 0 : index
    %26 = vector.load %arg4[%c0_10, %c0_11] : memref<96x32xbf16, #tpu.memory_space<vmem>>, vector<96x32xbf16>
    %cst_12 = arith.constant dense<0.000000e+00> : vector<96x8xf32>
    %27 = tpu.matmul %26, %25, %cst_12 {dimension_numbers = #tpu.dot_dimension_numbers<[1], [1], [0], [0], [0, 0, 1, 0], [], []>} : vector<96x32xbf16>, vector<8x32xbf16>, vector<96x8xf32> -> vector<96x8xf32>
    %28 = vector.extract_strided_slice %27 {offsets = [0, 0], sizes = [64, 8], strides = [1, 1]} : vector<96x8xf32> to vector<64x8xf32>
    %c0_13 = arith.constant 0 : index
    %c0_14 = arith.constant 0 : index
    %29 = vector.load %arg5[%c0_13, %c0_14] : memref<64x1xf32, #tpu.memory_space<vmem>>, vector<64x1xf32>
    %30 = vector.broadcast %29 : vector<64x1xf32> to vector<64x8xf32>
    %31 = arith.addf %28, %30 : vector<64x8xf32>
    %c0_15 = arith.constant 0 : index
    %c0_16 = arith.constant 0 : index
    %32 = vector.load %arg17[%c0_15, %c0_16] : memref<96x8xf32, #tpu.memory_space<vmem>>, vector<64x8xf32>
    tpu.vector_store %arg17[%c0_15, %c0_16], %31 {strides = array<i32>} : memref<96x8xf32, #tpu.memory_space<vmem>>, vector<64x8xf32>,
    %33 = vector.extract_strided_slice %27 {offsets = [64, 0], sizes = [32, 8], strides = [1, 1]} : vector<96x8xf32> to vector<32x8xf32>
    %c64 = arith.constant 64 : index
    %c0_17 = arith.constant 0 : index
    %34 = vector.load %arg17[%c64, %c0_17] : memref<96x8xf32, #tpu.memory_space<vmem>>, vector<32x8xf32>
    tpu.vector_store %arg17[%c64, %c0_17], %33 {strides = array<i32>} : memref<96x8xf32, #tpu.memory_space<vmem>>, vector<32x8xf32>,
    %c0_18 = arith.constant 0 : index
    %c0_19 = arith.constant 0 : index
    %35 = vector.load %arg17[%c0_18, %c0_19] : memref<96x8xf32, #tpu.memory_space<vmem>>, vector<8x8xf32>
    %36 = arith.truncf %35 : vector<8x8xf32> to vector<8x8xbf16>
    %c32 = arith.constant 32 : index
    %c0_20 = arith.constant 0 : index
    %37 = vector.load %arg17[%c32, %c0_20] : memref<96x8xf32, #tpu.memory_space<vmem>>, vector<8x8xf32>
    %38 = arith.truncf %37 : vector<8x8xf32> to vector<8x8xbf16>
    %c64_21 = arith.constant 64 : index
    %c0_22 = arith.constant 0 : index
    %39 = vector.load %arg17[%c64_21, %c0_22] : memref<96x8xf32, #tpu.memory_space<vmem>>, vector<8x8xf32>
    %40 = arith.truncf %39 : vector<8x8xf32> to vector<8x8xbf16>
    %cst_23 = arith.constant dense<0.000000e+00> : vector<8x8xf32>
    %41 = tpu.matmul %38, %36, %cst_23 {dimension_numbers = #tpu.dot_dimension_numbers<[0], [0], [1], [1], [0, 1, 1, 1], [], []>} : vector<8x8xbf16>, vector<8x8xbf16>, vector<8x8xf32> -> vector<8x8xf32>
    %c0_24 = arith.constant 0 : index
    %c0_25 = arith.constant 0 : index
    %c0_26 = arith.constant 0 : index
    %42 = vector.load %arg8[%c0_24, %c0_25, %c0_26] : memref<4x8x8xbf16, #tpu.memory_space<vmem>>, vector<1x8x8xbf16>
    %43 = vector.shape_cast %42 : vector<1x8x8xbf16> to vector<8x8xbf16>
    %44 = arith.extf %43 : vector<8x8xbf16> to vector<8x8xf32>
    %45 = arith.addf %41, %44 : vector<8x8xf32>
    %cst_27 = arith.constant dense<0xFF800000> : vector<8xf32>
    %46 = vector.multi_reduction <maximumf>, %45, %cst_27 [0] : vector<8x8xf32> to vector<8xf32>
    %47 = vector.shape_cast %46 : vector<8xf32> to vector<1x8xf32>
    %48 = vector.broadcast %47 : vector<1x8xf32> to vector<8x8xf32>
    %49 = arith.subf %45, %48 : vector<8x8xf32>
    %50 = math.exp %49 : vector<8x8xf32>
    %cst_28 = arith.constant dense<0.000000e+00> : vector<8xf32>
    %51 = vector.multi_reduction <add>, %50, %cst_28 [0] : vector<8x8xf32> to vector<8xf32>
    %52 = vector.shape_cast %51 : vector<8xf32> to vector<1x8xf32>
    %53 = arith.truncf %50 : vector<8x8xf32> to vector<8x8xbf16>
    %cst_29 = arith.constant dense<0.000000e+00> : vector<8x8xf32>
    %54 = tpu.matmul %40, %53, %cst_29 {dimension_numbers = #tpu.dot_dimension_numbers<[1], [0], [0], [1], [0, 0, 1, 1], [], []>} : vector<8x8xbf16>, vector<8x8xbf16>, vector<8x8xf32> -> vector<8x8xf32>
    %55 = tpu.reciprocal %52 {approx = true} : vector<1x8xf32> -> vector<1x8xf32>
    %56 = vector.broadcast %55 : vector<1x8xf32> to vector<8x8xf32>
    %57 = arith.mulf %54, %56 : vector<8x8xf32>
    %c0_30 = arith.constant 0 : index
    %c0_31 = arith.constant 0 : index
    %58 = vector.load %arg18[%c0_30, %c0_31] : memref<32x8xf32, #tpu.memory_space<vmem>>, vector<8x8xf32>
    tpu.vector_store %arg18[%c0_30, %c0_31], %57 {strides = array<i32>} : memref<32x8xf32, #tpu.memory_space<vmem>>, vector<8x8xf32>,
    %c8 = arith.constant 8 : index
    %c0_32 = arith.constant 0 : index
    %59 = vector.load %arg17[%c8, %c0_32] : memref<96x8xf32, #tpu.memory_space<vmem>>, vector<8x8xf32>
    %60 = arith.truncf %59 : vector<8x8xf32> to vector<8x8xbf16>
    %c40 = arith.constant 40 : index
    %c0_33 = arith.constant 0 : index
    %61 = vector.load %arg17[%c40, %c0_33] : memref<96x8xf32, #tpu.memory_space<vmem>>, vector<8x8xf32>
    %62 = arith.truncf %61 : vector<8x8xf32> to vector<8x8xbf16>
    %c72 = arith.constant 72 : index
    %c0_34 = arith.constant 0 : index
    %63 = vector.load %arg17[%c72, %c0_34] : memref<96x8xf32, #tpu.memory_space<vmem>>, vector<8x8xf32>
    %64 = arith.truncf %63 : vector<8x8xf32> to vector<8x8xbf16>
    %cst_35 = arith.constant dense<0.000000e+00> : vector<8x8xf32>
    %65 = tpu.matmul %62, %60, %cst_35 {dimension_numbers = #tpu.dot_dimension_numbers<[0], [0], [1], [1], [0, 1, 1, 1], [], []>} : vector<8x8xbf16>, vector<8x8xbf16>, vector<8x8xf32> -> vector<8x8xf32>
    %c1 = arith.constant 1 : index
    %c0_36 = arith.constant 0 : index
    %c0_37 = arith.constant 0 : index
    %66 = vector.load %arg8[%c1, %c0_36, %c0_37] : memref<4x8x8xbf16, #tpu.memory_space<vmem>>, vector<1x8x8xbf16>
    %67 = vector.shape_cast %66 : vector<1x8x8xbf16> to vector<8x8xbf16>
    %68 = arith.extf %67 : vector<8x8xbf16> to vector<8x8xf32>
    %69 = arith.addf %65, %68 : vector<8x8xf32>
    %cst_38 = arith.constant dense<0xFF800000> : vector<8xf32>
    %70 = vector.multi_reduction <maximumf>, %69, %cst_38 [0] : vector<8x8xf32> to vector<8xf32>
    %71 = vector.shape_cast %70 : vector<8xf32> to vector<1x8xf32>
    %72 = vector.broadcast %71 : vector<1x8xf32> to vector<8x8xf32>
    %73 = arith.subf %69, %72 : vector<8x8xf32>
    %74 = math.exp %73 : vector<8x8xf32>
    %cst_39 = arith.constant dense<0.000000e+00> : vector<8xf32>
    %75 = vector.multi_reduction <add>, %74, %cst_39 [0] : vector<8x8xf32> to vector<8xf32>
    %76 = vector.shape_cast %75 : vector<8xf32> to vector<1x8xf32>
    %77 = arith.truncf %74 : vector<8x8xf32> to vector<8x8xbf16>
    %cst_40 = arith.constant dense<0.000000e+00> : vector<8x8xf32>
    %78 = tpu.matmul %64, %77, %cst_40 {dimension_numbers = #tpu.dot_dimension_numbers<[1], [0], [0], [1], [0, 0, 1, 1], [], []>} : vector<8x8xbf16>, vector<8x8xbf16>, vector<8x8xf32> -> vector<8x8xf32>
    %79 = tpu.reciprocal %76 {approx = true} : vector<1x8xf32> -> vector<1x8xf32>
    %80 = vector.broadcast %79 : vector<1x8xf32> to vector<8x8xf32>
    %81 = arith.mulf %78, %80 : vector<8x8xf32>
    %c8_41 = arith.constant 8 : index
    %c0_42 = arith.constant 0 : index
    %82 = vector.load %arg18[%c8_41, %c0_42] : memref<32x8xf32, #tpu.memory_space<vmem>>, vector<8x8xf32>
    tpu.vector_store %arg18[%c8_41, %c0_42], %81 {strides = array<i32>} : memref<32x8xf32, #tpu.memory_space<vmem>>, vector<8x8xf32>,
    %c16 = arith.constant 16 : index
    %c0_43 = arith.constant 0 : index
    %83 = vector.load %arg17[%c16, %c0_43] : memref<96x8xf32, #tpu.memory_space<vmem>>, vector<8x8xf32>
    %84 = arith.truncf %83 : vector<8x8xf32> to vector<8x8xbf16>
    %c48 = arith.constant 48 : index
    %c0_44 = arith.constant 0 : index
    %85 = vector.load %arg17[%c48, %c0_44] : memref<96x8xf32, #tpu.memory_space<vmem>>, vector<8x8xf32>
    %86 = arith.truncf %85 : vector<8x8xf32> to vector<8x8xbf16>
    %c80 = arith.constant 80 : index
    %c0_45 = arith.constant 0 : index
    %87 = vector.load %arg17[%c80, %c0_45] : memref<96x8xf32, #tpu.memory_space<vmem>>, vector<8x8xf32>
    %88 = arith.truncf %87 : vector<8x8xf32> to vector<8x8xbf16>
    %cst_46 = arith.constant dense<0.000000e+00> : vector<8x8xf32>
    %89 = tpu.matmul %86, %84, %cst_46 {dimension_numbers = #tpu.dot_dimension_numbers<[0], [0], [1], [1], [0, 1, 1, 1], [], []>} : vector<8x8xbf16>, vector<8x8xbf16>, vector<8x8xf32> -> vector<8x8xf32>
    %c2 = arith.constant 2 : index
    %c0_47 = arith.constant 0 : index
    %c0_48 = arith.constant 0 : index
    %90 = vector.load %arg8[%c2, %c0_47, %c0_48] : memref<4x8x8xbf16, #tpu.memory_space<vmem>>, vector<1x8x8xbf16>
    %91 = vector.shape_cast %90 : vector<1x8x8xbf16> to vector<8x8xbf16>
    %92 = arith.extf %91 : vector<8x8xbf16> to vector<8x8xf32>
    %93 = arith.addf %89, %92 : vector<8x8xf32>
    %cst_49 = arith.constant dense<0xFF800000> : vector<8xf32>
    %94 = vector.multi_reduction <maximumf>, %93, %cst_49 [0] : vector<8x8xf32> to vector<8xf32>
    %95 = vector.shape_cast %94 : vector<8xf32> to vector<1x8xf32>
    %96 = vector.broadcast %95 : vector<1x8xf32> to vector<8x8xf32>
    %97 = arith.subf %93, %96 : vector<8x8xf32>
    %98 = math.exp %97 : vector<8x8xf32>
    %cst_50 = arith.constant dense<0.000000e+00> : vector<8xf32>
    %99 = vector.multi_reduction <add>, %98, %cst_50 [0] : vector<8x8xf32> to vector<8xf32>
    %100 = vector.shape_cast %99 : vector<8xf32> to vector<1x8xf32>
    %101 = arith.truncf %98 : vector<8x8xf32> to vector<8x8xbf16>
    %cst_51 = arith.constant dense<0.000000e+00> : vector<8x8xf32>
    %102 = tpu.matmul %88, %101, %cst_51 {dimension_numbers = #tpu.dot_dimension_numbers<[1], [0], [0], [1], [0, 0, 1, 1], [], []>} : vector<8x8xbf16>, vector<8x8xbf16>, vector<8x8xf32> -> vector<8x8xf32>
    %103 = tpu.reciprocal %100 {approx = true} : vector<1x8xf32> -> vector<1x8xf32>
    %104 = vector.broadcast %103 : vector<1x8xf32> to vector<8x8xf32>
    %105 = arith.mulf %102, %104 : vector<8x8xf32>
    %c16_52 = arith.constant 16 : index
    %c0_53 = arith.constant 0 : index
    %106 = vector.load %arg18[%c16_52, %c0_53] : memref<32x8xf32, #tpu.memory_space<vmem>>, vector<8x8xf32>
    tpu.vector_store %arg18[%c16_52, %c0_53], %105 {strides = array<i32>} : memref<32x8xf32, #tpu.memory_space<vmem>>, vector<8x8xf32>,
    %c24 = arith.constant 24 : index
    %c0_54 = arith.constant 0 : index
    %107 = vector.load %arg17[%c24, %c0_54] : memref<96x8xf32, #tpu.memory_space<vmem>>, vector<8x8xf32>
    %108 = arith.truncf %107 : vector<8x8xf32> to vector<8x8xbf16>
    %c56 = arith.constant 56 : index
    %c0_55 = arith.constant 0 : index
    %109 = vector.load %arg17[%c56, %c0_55] : memref<96x8xf32, #tpu.memory_space<vmem>>, vector<8x8xf32>
    %110 = arith.truncf %109 : vector<8x8xf32> to vector<8x8xbf16>
    %c88 = arith.constant 88 : index
    %c0_56 = arith.constant 0 : index
    %111 = vector.load %arg17[%c88, %c0_56] : memref<96x8xf32, #tpu.memory_space<vmem>>, vector<8x8xf32>
    %112 = arith.truncf %111 : vector<8x8xf32> to vector<8x8xbf16>
    %cst_57 = arith.constant dense<0.000000e+00> : vector<8x8xf32>
    %113 = tpu.matmul %110, %108, %cst_57 {dimension_numbers = #tpu.dot_dimension_numbers<[0], [0], [1], [1], [0, 1, 1, 1], [], []>} : vector<8x8xbf16>, vector<8x8xbf16>, vector<8x8xf32> -> vector<8x8xf32>
    %c3 = arith.constant 3 : index
    %c0_58 = arith.constant 0 : index
    %c0_59 = arith.constant 0 : index
    %114 = vector.load %arg8[%c3, %c0_58, %c0_59] : memref<4x8x8xbf16, #tpu.memory_space<vmem>>, vector<1x8x8xbf16>
    %115 = vector.shape_cast %114 : vector<1x8x8xbf16> to vector<8x8xbf16>
    %116 = arith.extf %115 : vector<8x8xbf16> to vector<8x8xf32>
    %117 = arith.addf %113, %116 : vector<8x8xf32>
    %cst_60 = arith.constant dense<0xFF800000> : vector<8xf32>
    %118 = vector.multi_reduction <maximumf>, %117, %cst_60 [0] : vector<8x8xf32> to vector<8xf32>
    %119 = vector.shape_cast %118 : vector<8xf32> to vector<1x8xf32>
    %120 = vector.broadcast %119 : vector<1x8xf32> to vector<8x8xf32>
    %121 = arith.subf %117, %120 : vector<8x8xf32>
    %122 = math.exp %121 : vector<8x8xf32>
    %cst_61 = arith.constant dense<0.000000e+00> : vector<8xf32>
    %123 = vector.multi_reduction <add>, %122, %cst_61 [0] : vector<8x8xf32> to vector<8xf32>
    %124 = vector.shape_cast %123 : vector<8xf32> to vector<1x8xf32>
    %125 = arith.truncf %122 : vector<8x8xf32> to vector<8x8xbf16>
    %cst_62 = arith.constant dense<0.000000e+00> : vector<8x8xf32>
    %126 = tpu.matmul %112, %125, %cst_62 {dimension_numbers = #tpu.dot_dimension_numbers<[1], [0], [0], [1], [0, 0, 1, 1], [], []>} : vector<8x8xbf16>, vector<8x8xbf16>, vector<8x8xf32> -> vector<8x8xf32>
    %127 = tpu.reciprocal %124 {approx = true} : vector<1x8xf32> -> vector<1x8xf32>
    %128 = vector.broadcast %127 : vector<1x8xf32> to vector<8x8xf32>
    %129 = arith.mulf %126, %128 : vector<8x8xf32>
    %c24_63 = arith.constant 24 : index
    %c0_64 = arith.constant 0 : index
    %130 = vector.load %arg18[%c24_63, %c0_64] : memref<32x8xf32, #tpu.memory_space<vmem>>, vector<8x8xf32>
    tpu.vector_store %arg18[%c24_63, %c0_64], %129 {strides = array<i32>} : memref<32x8xf32, #tpu.memory_space<vmem>>, vector<8x8xf32>,
    %c0_65 = arith.constant 0 : index
    %c0_66 = arith.constant 0 : index
    %131 = vector.load %arg18[%c0_65, %c0_66] : memref<32x8xf32, #tpu.memory_space<vmem>>, vector<32x8xf32>
    %132 = arith.truncf %131 : vector<32x8xf32> to vector<32x8xbf16>
    %c0_67 = arith.constant 0 : index
    %c0_68 = arith.constant 0 : index
    %133 = vector.load %arg6[%c0_67, %c0_68] : memref<32x32xbf16, #tpu.memory_space<vmem>>, vector<32x32xbf16>
    %cst_69 = arith.constant dense<0.000000e+00> : vector<8x32xf32>
    %134 = tpu.matmul %132, %133, %cst_69 {dimension_numbers = #tpu.dot_dimension_numbers<[0], [0], [1], [1], [0, 1, 1, 1], [], []>} : vector<32x8xbf16>, vector<32x32xbf16>, vector<8x32xf32> -> vector<8x32xf32>
    %c0_70 = arith.constant 0 : index
    %c0_71 = arith.constant 0 : index
    %135 = vector.load %arg7[%c0_70, %c0_71] : memref<1x32xf32, #tpu.memory_space<vmem>>, vector<1x32xf32>
    %136 = vector.broadcast %135 : vector<1x32xf32> to vector<8x32xf32>
    %137 = arith.addf %134, %136 : vector<8x32xf32>
    %c0_72 = arith.constant 0 : index
    %c0_73 = arith.constant 0 : index
    %138 = vector.load %arg19[%c0_72, %c0_73] : memref<16x32xf32, #tpu.memory_space<vmem>>, vector<8x32xf32>
    tpu.vector_store %arg19[%c0_72, %c0_73], %137 {strides = array<i32>} : memref<16x32xf32, #tpu.memory_space<vmem>>, vector<8x32xf32>,
    %139 = vector.extract_strided_slice %23 {offsets = [8, 0], sizes = [8, 32], strides = [1, 1]} : vector<16x32xf32> to vector<8x32xf32>
    %140 = arith.truncf %139 : vector<8x32xf32> to vector<8x32xbf16>
    %c0_74 = arith.constant 0 : index
    %c0_75 = arith.constant 0 : index
    %141 = vector.load %arg4[%c0_74, %c0_75] : memref<96x32xbf16, #tpu.memory_space<vmem>>, vector<96x32xbf16>
    %cst_76 = arith.constant dense<0.000000e+00> : vector<96x8xf32>
    %142 = tpu.matmul %141, %140, %cst_76 {dimension_numbers = #tpu.dot_dimension_numbers<[1], [1], [0], [0], [0, 0, 1, 0], [], []>} : vector<96x32xbf16>, vector<8x32xbf16>, vector<96x8xf32> -> vector<96x8xf32>
    %143 = vector.extract_strided_slice %142 {offsets = [0, 0], sizes = [64, 8], strides = [1, 1]} : vector<96x8xf32> to vector<64x8xf32>
    %c0_77 = arith.constant 0 : index
    %c0_78 = arith.constant 0 : index
    %144 = vector.load %arg5[%c0_77, %c0_78] : memref<64x1xf32, #tpu.memory_space<vmem>>, vector<64x1xf32>
    %145 = vector.broadcast %144 : vector<64x1xf32> to vector<64x8xf32>
    %146 = arith.addf %143, %145 : vector<64x8xf32>
    %c0_79 = arith.constant 0 : index
    %c0_80 = arith.constant 0 : index
    %147 = vector.load %arg17[%c0_79, %c0_80] : memref<96x8xf32, #tpu.memory_space<vmem>>, vector<64x8xf32>
    tpu.vector_store %arg17[%c0_79, %c0_80], %146 {strides = array<i32>} : memref<96x8xf32, #tpu.memory_space<vmem>>, vector<64x8xf32>,
    %148 = vector.extract_strided_slice %142 {offsets = [64, 0], sizes = [32, 8], strides = [1, 1]} : vector<96x8xf32> to vector<32x8xf32>
    %c64_81 = arith.constant 64 : index
    %c0_82 = arith.constant 0 : index
    %149 = vector.load %arg17[%c64_81, %c0_82] : memref<96x8xf32, #tpu.memory_space<vmem>>, vector<32x8xf32>
    tpu.vector_store %arg17[%c64_81, %c0_82], %148 {strides = array<i32>} : memref<96x8xf32, #tpu.memory_space<vmem>>, vector<32x8xf32>,
    %c0_83 = arith.constant 0 : index
    %c0_84 = arith.constant 0 : index
    %150 = vector.load %arg17[%c0_83, %c0_84] : memref<96x8xf32, #tpu.memory_space<vmem>>, vector<8x8xf32>
    %151 = arith.truncf %150 : vector<8x8xf32> to vector<8x8xbf16>
    %c32_85 = arith.constant 32 : index
    %c0_86 = arith.constant 0 : index
    %152 = vector.load %arg17[%c32_85, %c0_86] : memref<96x8xf32, #tpu.memory_space<vmem>>, vector<8x8xf32>
    %153 = arith.truncf %152 : vector<8x8xf32> to vector<8x8xbf16>
    %c64_87 = arith.constant 64 : index
    %c0_88 = arith.constant 0 : index
    %154 = vector.load %arg17[%c64_87, %c0_88] : memref<96x8xf32, #tpu.memory_space<vmem>>, vector<8x8xf32>
    %155 = arith.truncf %154 : vector<8x8xf32> to vector<8x8xbf16>
    %cst_89 = arith.constant dense<0.000000e+00> : vector<8x8xf32>
    %156 = tpu.matmul %153, %151, %cst_89 {dimension_numbers = #tpu.dot_dimension_numbers<[0], [0], [1], [1], [0, 1, 1, 1], [], []>} : vector<8x8xbf16>, vector<8x8xbf16>, vector<8x8xf32> -> vector<8x8xf32>
    %c0_90 = arith.constant 0 : index
    %c0_91 = arith.constant 0 : index
    %c0_92 = arith.constant 0 : index
    %157 = vector.load %arg8[%c0_90, %c0_91, %c0_92] : memref<4x8x8xbf16, #tpu.memory_space<vmem>>, vector<1x8x8xbf16>
    %158 = vector.shape_cast %157 : vector<1x8x8xbf16> to vector<8x8xbf16>
    %159 = arith.extf %158 : vector<8x8xbf16> to vector<8x8xf32>
    %160 = arith.addf %156, %159 : vector<8x8xf32>
    %cst_93 = arith.constant dense<0xFF800000> : vector<8xf32>
    %161 = vector.multi_reduction <maximumf>, %160, %cst_93 [0] : vector<8x8xf32> to vector<8xf32>
    %162 = vector.shape_cast %161 : vector<8xf32> to vector<1x8xf32>
    %163 = vector.broadcast %162 : vector<1x8xf32> to vector<8x8xf32>
    %164 = arith.subf %160, %163 : vector<8x8xf32>
    %165 = math.exp %164 : vector<8x8xf32>
    %cst_94 = arith.constant dense<0.000000e+00> : vector<8xf32>
    %166 = vector.multi_reduction <add>, %165, %cst_94 [0] : vector<8x8xf32> to vector<8xf32>
    %167 = vector.shape_cast %166 : vector<8xf32> to vector<1x8xf32>
    %168 = arith.truncf %165 : vector<8x8xf32> to vector<8x8xbf16>
    %cst_95 = arith.constant dense<0.000000e+00> : vector<8x8xf32>
    %169 = tpu.matmul %155, %168, %cst_95 {dimension_numbers = #tpu.dot_dimension_numbers<[1], [0], [0], [1], [0, 0, 1, 1], [], []>} : vector<8x8xbf16>, vector<8x8xbf16>, vector<8x8xf32> -> vector<8x8xf32>
    %170 = tpu.reciprocal %167 {approx = true} : vector<1x8xf32> -> vector<1x8xf32>
    %171 = vector.broadcast %170 : vector<1x8xf32> to vector<8x8xf32>
    %172 = arith.mulf %169, %171 : vector<8x8xf32>
    %c0_96 = arith.constant 0 : index
    %c0_97 = arith.constant 0 : index
    %173 = vector.load %arg18[%c0_96, %c0_97] : memref<32x8xf32, #tpu.memory_space<vmem>>, vector<8x8xf32>
    tpu.vector_store %arg18[%c0_96, %c0_97], %172 {strides = array<i32>} : memref<32x8xf32, #tpu.memory_space<vmem>>, vector<8x8xf32>,
    %c8_98 = arith.constant 8 : index
    %c0_99 = arith.constant 0 : index
    %174 = vector.load %arg17[%c8_98, %c0_99] : memref<96x8xf32, #tpu.memory_space<vmem>>, vector<8x8xf32>
    %175 = arith.truncf %174 : vector<8x8xf32> to vector<8x8xbf16>
    %c40_100 = arith.constant 40 : index
    %c0_101 = arith.constant 0 : index
    %176 = vector.load %arg17[%c40_100, %c0_101] : memref<96x8xf32, #tpu.memory_space<vmem>>, vector<8x8xf32>
    %177 = arith.truncf %176 : vector<8x8xf32> to vector<8x8xbf16>
    %c72_102 = arith.constant 72 : index
    %c0_103 = arith.constant 0 : index
    %178 = vector.load %arg17[%c72_102, %c0_103] : memref<96x8xf32, #tpu.memory_space<vmem>>, vector<8x8xf32>
    %179 = arith.truncf %178 : vector<8x8xf32> to vector<8x8xbf16>
    %cst_104 = arith.constant dense<0.000000e+00> : vector<8x8xf32>
    %180 = tpu.matmul %177, %175, %cst_104 {dimension_numbers = #tpu.dot_dimension_numbers<[0], [0], [1], [1], [0, 1, 1, 1], [], []>} : vector<8x8xbf16>, vector<8x8xbf16>, vector<8x8xf32> -> vector<8x8xf32>
    %c1_105 = arith.constant 1 : index
    %c0_106 = arith.constant 0 : index
    %c0_107 = arith.constant 0 : index
    %181 = vector.load %arg8[%c1_105, %c0_106, %c0_107] : memref<4x8x8xbf16, #tpu.memory_space<vmem>>, vector<1x8x8xbf16>
    %182 = vector.shape_cast %181 : vector<1x8x8xbf16> to vector<8x8xbf16>
    %183 = arith.extf %182 : vector<8x8xbf16> to vector<8x8xf32>
    %184 = arith.addf %180, %183 : vector<8x8xf32>
    %cst_108 = arith.constant dense<0xFF800000> : vector<8xf32>
    %185 = vector.multi_reduction <maximumf>, %184, %cst_108 [0] : vector<8x8xf32> to vector<8xf32>
    %186 = vector.shape_cast %185 : vector<8xf32> to vector<1x8xf32>
    %187 = vector.broadcast %186 : vector<1x8xf32> to vector<8x8xf32>
    %188 = arith.subf %184, %187 : vector<8x8xf32>
    %189 = math.exp %188 : vector<8x8xf32>
    %cst_109 = arith.constant dense<0.000000e+00> : vector<8xf32>
    %190 = vector.multi_reduction <add>, %189, %cst_109 [0] : vector<8x8xf32> to vector<8xf32>
    %191 = vector.shape_cast %190 : vector<8xf32> to vector<1x8xf32>
    %192 = arith.truncf %189 : vector<8x8xf32> to vector<8x8xbf16>
    %cst_110 = arith.constant dense<0.000000e+00> : vector<8x8xf32>
    %193 = tpu.matmul %179, %192, %cst_110 {dimension_numbers = #tpu.dot_dimension_numbers<[1], [0], [0], [1], [0, 0, 1, 1], [], []>} : vector<8x8xbf16>, vector<8x8xbf16>, vector<8x8xf32> -> vector<8x8xf32>
    %194 = tpu.reciprocal %191 {approx = true} : vector<1x8xf32> -> vector<1x8xf32>
    %195 = vector.broadcast %194 : vector<1x8xf32> to vector<8x8xf32>
    %196 = arith.mulf %193, %195 : vector<8x8xf32>
    %c8_111 = arith.constant 8 : index
    %c0_112 = arith.constant 0 : index
    %197 = vector.load %arg18[%c8_111, %c0_112] : memref<32x8xf32, #tpu.memory_space<vmem>>, vector<8x8xf32>
    tpu.vector_store %arg18[%c8_111, %c0_112], %196 {strides = array<i32>} : memref<32x8xf32, #tpu.memory_space<vmem>>, vector<8x8xf32>,
    %c16_113 = arith.constant 16 : index
    %c0_114 = arith.constant 0 : index
    %198 = vector.load %arg17[%c16_113, %c0_114] : memref<96x8xf32, #tpu.memory_space<vmem>>, vector<8x8xf32>
    %199 = arith.truncf %198 : vector<8x8xf32> to vector<8x8xbf16>
    %c48_115 = arith.constant 48 : index
    %c0_116 = arith.constant 0 : index
    %200 = vector.load %arg17[%c48_115, %c0_116] : memref<96x8xf32, #tpu.memory_space<vmem>>, vector<8x8xf32>
    %201 = arith.truncf %200 : vector<8x8xf32> to vector<8x8xbf16>
    %c80_117 = arith.constant 80 : index
    %c0_118 = arith.constant 0 : index
    %202 = vector.load %arg17[%c80_117, %c0_118] : memref<96x8xf32, #tpu.memory_space<vmem>>, vector<8x8xf32>
    %203 = arith.truncf %202 : vector<8x8xf32> to vector<8x8xbf16>
    %cst_119 = arith.constant dense<0.000000e+00> : vector<8x8xf32>
    %204 = tpu.matmul %201, %199, %cst_119 {dimension_numbers = #tpu.dot_dimension_numbers<[0], [0], [1], [1], [0, 1, 1, 1], [], []>} : vector<8x8xbf16>, vector<8x8xbf16>, vector<8x8xf32> -> vector<8x8xf32>
    %c2_120 = arith.constant 2 : index
    %c0_121 = arith.constant 0 : index
    %c0_122 = arith.constant 0 : index
    %205 = vector.load %arg8[%c2_120, %c0_121, %c0_122] : memref<4x8x8xbf16, #tpu.memory_space<vmem>>, vector<1x8x8xbf16>
    %206 = vector.shape_cast %205 : vector<1x8x8xbf16> to vector<8x8xbf16>
    %207 = arith.extf %206 : vector<8x8xbf16> to vector<8x8xf32>
    %208 = arith.addf %204, %207 : vector<8x8xf32>
    %cst_123 = arith.constant dense<0xFF800000> : vector<8xf32>
    %209 = vector.multi_reduction <maximumf>, %208, %cst_123 [0] : vector<8x8xf32> to vector<8xf32>
    %210 = vector.shape_cast %209 : vector<8xf32> to vector<1x8xf32>
    %211 = vector.broadcast %210 : vector<1x8xf32> to vector<8x8xf32>
    %212 = arith.subf %208, %211 : vector<8x8xf32>
    %213 = math.exp %212 : vector<8x8xf32>
    %cst_124 = arith.constant dense<0.000000e+00> : vector<8xf32>
    %214 = vector.multi_reduction <add>, %213, %cst_124 [0] : vector<8x8xf32> to vector<8xf32>
    %215 = vector.shape_cast %214 : vector<8xf32> to vector<1x8xf32>
    %216 = arith.truncf %213 : vector<8x8xf32> to vector<8x8xbf16>
    %cst_125 = arith.constant dense<0.000000e+00> : vector<8x8xf32>
    %217 = tpu.matmul %203, %216, %cst_125 {dimension_numbers = #tpu.dot_dimension_numbers<[1], [0], [0], [1], [0, 0, 1, 1], [], []>} : vector<8x8xbf16>, vector<8x8xbf16>, vector<8x8xf32> -> vector<8x8xf32>
    %218 = tpu.reciprocal %215 {approx = true} : vector<1x8xf32> -> vector<1x8xf32>
    %219 = vector.broadcast %218 : vector<1x8xf32> to vector<8x8xf32>
    %220 = arith.mulf %217, %219 : vector<8x8xf32>
    %c16_126 = arith.constant 16 : index
    %c0_127 = arith.constant 0 : index
    %221 = vector.load %arg18[%c16_126, %c0_127] : memref<32x8xf32, #tpu.memory_space<vmem>>, vector<8x8xf32>
    tpu.vector_store %arg18[%c16_126, %c0_127], %220 {strides = array<i32>} : memref<32x8xf32, #tpu.memory_space<vmem>>, vector<8x8xf32>,
    %c24_128 = arith.constant 24 : index
    %c0_129 = arith.constant 0 : index
    %222 = vector.load %arg17[%c24_128, %c0_129] : memref<96x8xf32, #tpu.memory_space<vmem>>, vector<8x8xf32>
    %223 = arith.truncf %222 : vector<8x8xf32> to vector<8x8xbf16>
    %c56_130 = arith.constant 56 : index
    %c0_131 = arith.constant 0 : index
    %224 = vector.load %arg17[%c56_130, %c0_131] : memref<96x8xf32, #tpu.memory_space<vmem>>, vector<8x8xf32>
    %225 = arith.truncf %224 : vector<8x8xf32> to vector<8x8xbf16>
    %c88_132 = arith.constant 88 : index
    %c0_133 = arith.constant 0 : index
    %226 = vector.load %arg17[%c88_132, %c0_133] : memref<96x8xf32, #tpu.memory_space<vmem>>, vector<8x8xf32>
    %227 = arith.truncf %226 : vector<8x8xf32> to vector<8x8xbf16>
    %cst_134 = arith.constant dense<0.000000e+00> : vector<8x8xf32>
    %228 = tpu.matmul %225, %223, %cst_134 {dimension_numbers = #tpu.dot_dimension_numbers<[0], [0], [1], [1], [0, 1, 1, 1], [], []>} : vector<8x8xbf16>, vector<8x8xbf16>, vector<8x8xf32> -> vector<8x8xf32>
    %c3_135 = arith.constant 3 : index
    %c0_136 = arith.constant 0 : index
    %c0_137 = arith.constant 0 : index
    %229 = vector.load %arg8[%c3_135, %c0_136, %c0_137] : memref<4x8x8xbf16, #tpu.memory_space<vmem>>, vector<1x8x8xbf16>
    %230 = vector.shape_cast %229 : vector<1x8x8xbf16> to vector<8x8xbf16>
    %231 = arith.extf %230 : vector<8x8xbf16> to vector<8x8xf32>
    %232 = arith.addf %228, %231 : vector<8x8xf32>
    %cst_138 = arith.constant dense<0xFF800000> : vector<8xf32>
    %233 = vector.multi_reduction <maximumf>, %232, %cst_138 [0] : vector<8x8xf32> to vector<8xf32>
    %234 = vector.shape_cast %233 : vector<8xf32> to vector<1x8xf32>
    %235 = vector.broadcast %234 : vector<1x8xf32> to vector<8x8xf32>
    %236 = arith.subf %232, %235 : vector<8x8xf32>
    %237 = math.exp %236 : vector<8x8xf32>
    %cst_139 = arith.constant dense<0.000000e+00> : vector<8xf32>
    %238 = vector.multi_reduction <add>, %237, %cst_139 [0] : vector<8x8xf32> to vector<8xf32>
    %239 = vector.shape_cast %238 : vector<8xf32> to vector<1x8xf32>
    %240 = arith.truncf %237 : vector<8x8xf32> to vector<8x8xbf16>
    %cst_140 = arith.constant dense<0.000000e+00> : vector<8x8xf32>
    %241 = tpu.matmul %227, %240, %cst_140 {dimension_numbers = #tpu.dot_dimension_numbers<[1], [0], [0], [1], [0, 0, 1, 1], [], []>} : vector<8x8xbf16>, vector<8x8xbf16>, vector<8x8xf32> -> vector<8x8xf32>
    %242 = tpu.reciprocal %239 {approx = true} : vector<1x8xf32> -> vector<1x8xf32>
    %243 = vector.broadcast %242 : vector<1x8xf32> to vector<8x8xf32>
    %244 = arith.mulf %241, %243 : vector<8x8xf32>
    %c24_141 = arith.constant 24 : index
    %c0_142 = arith.constant 0 : index
    %245 = vector.load %arg18[%c24_141, %c0_142] : memref<32x8xf32, #tpu.memory_space<vmem>>, vector<8x8xf32>
    tpu.vector_store %arg18[%c24_141, %c0_142], %244 {strides = array<i32>} : memref<32x8xf32, #tpu.memory_space<vmem>>, vector<8x8xf32>,
    %c0_143 = arith.constant 0 : index
    %c0_144 = arith.constant 0 : index
    %246 = vector.load %arg18[%c0_143, %c0_144] : memref<32x8xf32, #tpu.memory_space<vmem>>, vector<32x8xf32>
    %247 = arith.truncf %246 : vector<32x8xf32> to vector<32x8xbf16>
    %c0_145 = arith.constant 0 : index
    %c0_146 = arith.constant 0 : index
    %248 = vector.load %arg6[%c0_145, %c0_146] : memref<32x32xbf16, #tpu.memory_space<vmem>>, vector<32x32xbf16>
    %cst_147 = arith.constant dense<0.000000e+00> : vector<8x32xf32>
    %249 = tpu.matmul %247, %248, %cst_147 {dimension_numbers = #tpu.dot_dimension_numbers<[0], [0], [1], [1], [0, 1, 1, 1], [], []>} : vector<32x8xbf16>, vector<32x32xbf16>, vector<8x32xf32> -> vector<8x32xf32>
    %c0_148 = arith.constant 0 : index
    %c0_149 = arith.constant 0 : index
    %250 = vector.load %arg7[%c0_148, %c0_149] : memref<1x32xf32, #tpu.memory_space<vmem>>, vector<1x32xf32>
    %251 = vector.broadcast %250 : vector<1x32xf32> to vector<8x32xf32>
    %252 = arith.addf %249, %251 : vector<8x32xf32>
    %c8_150 = arith.constant 8 : index
    %c0_151 = arith.constant 0 : index
    %253 = vector.load %arg19[%c8_150, %c0_151] : memref<16x32xf32, #tpu.memory_space<vmem>>, vector<8x32xf32>
    tpu.vector_store %arg19[%c8_150, %c0_151], %252 {strides = array<i32>} : memref<16x32xf32, #tpu.memory_space<vmem>>, vector<8x32xf32>,
    %c0_152 = arith.constant 0 : index
    %254 = memref.load %arg15[%c0_152] : memref<2xf32, #tpu.memory_space<smem>>
    %c1_153 = arith.constant 1 : index
    %255 = memref.load %arg15[%c1_153] : memref<2xf32, #tpu.memory_space<smem>>
    %c0_154 = arith.constant 0 : index
    %c0_155 = arith.constant 0 : index
    %256 = vector.load %arg19[%c0_154, %c0_155] : memref<16x32xf32, #tpu.memory_space<vmem>>, vector<16x32xf32>
    %257 = vector.broadcast %254 : f32 to vector<16x32xf32>
    %258 = arith.mulf %257, %256 : vector<16x32xf32>
    %259 = arith.addf %1, %258 : vector<16x32xf32>
    %cst_156 = arith.constant dense<0.000000e+00> : vector<16xf32>
    %260 = vector.multi_reduction <add>, %259, %cst_156 [1] : vector<16x32xf32> to vector<16xf32>
    %261 = vector.shape_cast %260 : vector<16xf32> to vector<16x1xf32>
    %cst_157 = arith.constant 3.200000e+01 : f32
    %262 = vector.broadcast %cst_157 : f32 to vector<16x1xf32>
    %263 = arith.divf %261, %262 : vector<16x1xf32>
    %264 = vector.broadcast %263 : vector<16x1xf32> to vector<16x32xf32>
    %265 = arith.subf %259, %264 : vector<16x32xf32>
    %266 = arith.mulf %265, %265 : vector<16x32xf32>
    %cst_158 = arith.constant dense<0.000000e+00> : vector<16xf32>
    %267 = vector.multi_reduction <add>, %266, %cst_158 [1] : vector<16x32xf32> to vector<16xf32>
    %268 = vector.shape_cast %267 : vector<16xf32> to vector<16x1xf32>
    %cst_159 = arith.constant 3.200000e+01 : f32
    %269 = vector.broadcast %cst_159 : f32 to vector<16x1xf32>
    %270 = arith.divf %268, %269 : vector<16x1xf32>
    %cst_160 = arith.constant 9.99999974E-6 : f32
    %271 = vector.broadcast %cst_160 : f32 to vector<16x1xf32>
    %272 = arith.addf %270, %271 : vector<16x1xf32>
    %273 = math.rsqrt %272 : vector<16x1xf32>
    %274 = vector.broadcast %273 : vector<16x1xf32> to vector<16x32xf32>
    %275 = arith.mulf %265, %274 : vector<16x32xf32>
    %c0_161 = arith.constant 0 : index
    %c0_162 = arith.constant 0 : index
    %276 = vector.load %arg9[%c0_161, %c0_162] : memref<1x32xf32, #tpu.memory_space<vmem>>, vector<1x32xf32>
    %277 = vector.broadcast %276 : vector<1x32xf32> to vector<16x32xf32>
    %278 = arith.mulf %275, %277 : vector<16x32xf32>
    %c0_163 = arith.constant 0 : index
    %c0_164 = arith.constant 0 : index
    %279 = vector.load %arg10[%c0_163, %c0_164] : memref<1x32xf32, #tpu.memory_space<vmem>>, vector<1x32xf32>
    %280 = vector.broadcast %279 : vector<1x32xf32> to vector<16x32xf32>
    %281 = arith.addf %278, %280 : vector<16x32xf32>
    %282 = arith.truncf %281 : vector<16x32xf32> to vector<16x32xbf16>
    %c0_165 = arith.constant 0 : index
    %c0_166 = arith.constant 0 : index
    %283 = vector.load %arg11[%c0_165, %c0_166] : memref<32x128xbf16, #tpu.memory_space<vmem>>, vector<32x128xbf16>
    %cst_167 = arith.constant dense<0.000000e+00> : vector<16x128xf32>
    %284 = tpu.matmul %282, %283, %cst_167 {dimension_numbers = #tpu.dot_dimension_numbers<[1], [0], [0], [1], [0, 0, 1, 1], [], []>} : vector<16x32xbf16>, vector<32x128xbf16>, vector<16x128xf32> -> vector<16x128xf32>
    %c0_168 = arith.constant 0 : index
    %c0_169 = arith.constant 0 : index
    %285 = vector.load %arg12[%c0_168, %c0_169] : memref<1x128xf32, #tpu.memory_space<vmem>>, vector<1x128xf32>
    %286 = vector.broadcast %285 : vector<1x128xf32> to vector<16x128xf32>
    %287 = arith.addf %284, %286 : vector<16x128xf32>
    %cst_170 = arith.constant 0.707106769 : f32
    %288 = vector.broadcast %cst_170 : f32 to vector<16x128xf32>
    %289 = arith.mulf %287, %288 : vector<16x128xf32>
    %cst_171 = arith.constant 0.000000e+00 : f32
    %290 = vector.broadcast %cst_171 : f32 to vector<16x128xf32>
    %291 = arith.cmpf oge, %289, %290 : vector<16x128xf32>
    %cst_172 = arith.constant 1.000000e+00 : f32
    %cst_173 = arith.constant -1.000000e+00 : f32
    %292 = vector.broadcast %cst_172 : f32 to vector<16x128xf32>
    %293 = vector.broadcast %cst_173 : f32 to vector<16x128xf32>
    %294 = arith.select %291, %292, %293 : vector<16x128xi1>, vector<16x128xf32>
    %295 = math.absf %289 : vector<16x128xf32>
    %cst_174 = arith.constant 0.327591091 : f32
    %296 = vector.broadcast %cst_174 : f32 to vector<16x128xf32>
    %297 = arith.mulf %296, %295 : vector<16x128xf32>
    %cst_175 = arith.constant 1.000000e+00 : f32
    %298 = vector.broadcast %cst_175 : f32 to vector<16x128xf32>
    %299 = arith.addf %298, %297 : vector<16x128xf32>
    %cst_176 = arith.constant 1.000000e+00 : f32
    %300 = vector.broadcast %cst_176 : f32 to vector<16x128xf32>
    %301 = arith.divf %300, %299 : vector<16x128xf32>
    %cst_177 = arith.constant 1.06140542 : f32
    %302 = vector.broadcast %cst_177 : f32 to vector<16x128xf32>
    %303 = arith.mulf %302, %301 : vector<16x128xf32>
    %cst_178 = arith.constant -1.45315206 : f32
    %304 = vector.broadcast %cst_178 : f32 to vector<16x128xf32>
    %305 = arith.addf %303, %304 : vector<16x128xf32>
    %306 = arith.mulf %305, %301 : vector<16x128xf32>
    %cst_179 = arith.constant 1.42141378 : f32
    %307 = vector.broadcast %cst_179 : f32 to vector<16x128xf32>
    %308 = arith.addf %306, %307 : vector<16x128xf32>
    %309 = arith.mulf %308, %301 : vector<16x128xf32>
    %cst_180 = arith.constant -0.284496725 : f32
    %310 = vector.broadcast %cst_180 : f32 to vector<16x128xf32>
    %311 = arith.addf %309, %310 : vector<16x128xf32>
    %312 = arith.mulf %311, %301 : vector<16x128xf32>
    %cst_181 = arith.constant 0.254829586 : f32
    %313 = vector.broadcast %cst_181 : f32 to vector<16x128xf32>
    %314 = arith.addf %312, %313 : vector<16x128xf32>
    %315 = arith.mulf %314, %301 : vector<16x128xf32>
    %cst_182 = arith.constant 0.000000e+00 : f32
    %316 = vector.broadcast %cst_182 : f32 to vector<16x128xf32>
    %317 = arith.subf %316, %295 : vector<16x128xf32>
    %318 = arith.mulf %317, %295 : vector<16x128xf32>
    %319 = math.exp %318 : vector<16x128xf32>
    %320 = arith.mulf %315, %319 : vector<16x128xf32>
    %cst_183 = arith.constant 1.000000e+00 : f32
    %321 = vector.broadcast %cst_183 : f32 to vector<16x128xf32>
    %322 = arith.subf %321, %320 : vector<16x128xf32>
    %323 = arith.mulf %294, %322 : vector<16x128xf32>
    %cst_184 = arith.constant 5.000000e-01 : f32
    %324 = vector.broadcast %cst_184 : f32 to vector<16x128xf32>
    %325 = arith.mulf %324, %287 : vector<16x128xf32>
    %cst_185 = arith.constant 1.000000e+00 : f32
    %326 = vector.broadcast %cst_185 : f32 to vector<16x128xf32>
    %327 = arith.addf %326, %323 : vector<16x128xf32>
    %328 = arith.mulf %325, %327 : vector<16x128xf32>
    %329 = arith.truncf %328 : vector<16x128xf32> to vector<16x128xbf16>
    %c0_186 = arith.constant 0 : index
    %c0_187 = arith.constant 0 : index
    %330 = vector.load %arg13[%c0_186, %c0_187] : memref<128x32xbf16, #tpu.memory_space<vmem>>, vector<128x32xbf16>
    %cst_188 = arith.constant dense<0.000000e+00> : vector<16x32xf32>
    %331 = tpu.matmul %329, %330, %cst_188 {dimension_numbers = #tpu.dot_dimension_numbers<[1], [0], [0], [1], [0, 0, 1, 1], [], []>} : vector<16x128xbf16>, vector<128x32xbf16>, vector<16x32xf32> -> vector<16x32xf32>
    %c0_189 = arith.constant 0 : index
    %c0_190 = arith.constant 0 : index
    %332 = vector.load %arg14[%c0_189, %c0_190] : memref<1x32xf32, #tpu.memory_space<vmem>>, vector<1x32xf32>
    %333 = vector.broadcast %332 : vector<1x32xf32> to vector<16x32xf32>
    %334 = arith.addf %331, %333 : vector<16x32xf32>
    %335 = vector.broadcast %255 : f32 to vector<16x32xf32>
    %336 = arith.mulf %335, %334 : vector<16x32xf32>
    %337 = arith.addf %259, %336 : vector<16x32xf32>
    %338 = vector.shape_cast %337 : vector<16x32xf32> to vector<2x8x32xf32>
    %c0_191 = arith.constant 0 : index
    %c0_192 = arith.constant 0 : index
    %c0_193 = arith.constant 0 : index
    %339 = vector.load %arg16[%c0_191, %c0_192, %c0_193] : memref<2x8x32xf32, #tpu.memory_space<vmem>>, vector<2x8x32xf32>
    tpu.vector_store %arg16[%c0_191, %c0_192, %c0_193], %338 {strides = array<i32>} : memref<2x8x32xf32, #tpu.memory_space<vmem>>, vector<2x8x32xf32>,
    return
  }
  func.func @transform_0(%arg0: i32) -> (i32, i32, i32) {
    %c0_i32 = arith.constant 0 : i32
    %c0_i32_0 = arith.constant 0 : i32
    %c0_i32_1 = arith.constant 0 : i32
    return %arg0, %c0_i32, %c0_i32_0 : i32, i32, i32
  }
  func.func @transform_1(%arg0: i32) -> (i32, i32) {
    %c0_i32 = arith.constant 0 : i32
    %c0_i32_0 = arith.constant 0 : i32
    %c0_i32_1 = arith.constant 0 : i32
    return %c0_i32, %c0_i32_0 : i32, i32
  }
  func.func @transform_2(%arg0: i32) -> (i32, i32) {
    %c0_i32 = arith.constant 0 : i32
    %c0_i32_0 = arith.constant 0 : i32
    %c0_i32_1 = arith.constant 0 : i32
    return %c0_i32, %c0_i32_0 : i32, i32
  }
  func.func @transform_3(%arg0: i32) -> (i32, i32) {
    %c0_i32 = arith.constant 0 : i32
    %c0_i32_0 = arith.constant 0 : i32
    %c0_i32_1 = arith.constant 0 : i32
    return %c0_i32, %c0_i32_0 : i32, i32
  }
  func.func @transform_4(%arg0: i32) -> (i32, i32) {
    %c0_i32 = arith.constant 0 : i32
    %c0_i32_0 = arith.constant 0 : i32
    %c0_i32_1 = arith.constant 0 : i32
    return %c0_i32, %c0_i32_0 : i32, i32
  }
  func.func @transform_5(%arg0: i32) -> (i32, i32) {
    %c0_i32 = arith.constant 0 : i32
    %c0_i32_0 = arith.constant 0 : i32
    %c0_i32_1 = arith.constant 0 : i32
    return %c0_i32, %c0_i32_0 : i32, i32
  }
  func.func @transform_6(%arg0: i32) -> (i32, i32) {
    %c0_i32 = arith.constant 0 : i32
    %c0_i32_0 = arith.constant 0 : i32
    %c0_i32_1 = arith.constant 0 : i32
    return %c0_i32, %c0_i32_0 : i32, i32
  }
  func.func @transform_7(%arg0: i32) -> (i32, i32, i32) {
    %c0_i32 = arith.constant 0 : i32
    %c0_i32_0 = arith.constant 0 : i32
    %c0_i32_1 = arith.constant 0 : i32
    %c0_i32_2 = arith.constant 0 : i32
    return %c0_i32, %c0_i32_0, %c0_i32_1 : i32, i32, i32
  }
  func.func @transform_8(%arg0: i32) -> (i32, i32) {
    %c0_i32 = arith.constant 0 : i32
    %c0_i32_0 = arith.constant 0 : i32
    %c0_i32_1 = arith.constant 0 : i32
    return %c0_i32, %c0_i32_0 : i32, i32
  }
  func.func @transform_9(%arg0: i32) -> (i32, i32) {
    %c0_i32 = arith.constant 0 : i32
    %c0_i32_0 = arith.constant 0 : i32
    %c0_i32_1 = arith.constant 0 : i32
    return %c0_i32, %c0_i32_0 : i32, i32
  }
  func.func @transform_10(%arg0: i32) -> (i32, i32) {
    %c0_i32 = arith.constant 0 : i32
    %c0_i32_0 = arith.constant 0 : i32
    %c0_i32_1 = arith.constant 0 : i32
    return %c0_i32, %c0_i32_0 : i32, i32
  }
  func.func @transform_11(%arg0: i32) -> (i32, i32) {
    %c0_i32 = arith.constant 0 : i32
    %c0_i32_0 = arith.constant 0 : i32
    %c0_i32_1 = arith.constant 0 : i32
    return %c0_i32, %c0_i32_0 : i32, i32
  }
  func.func @transform_12(%arg0: i32) -> (i32, i32) {
    %c0_i32 = arith.constant 0 : i32
    %c0_i32_0 = arith.constant 0 : i32
    %c0_i32_1 = arith.constant 0 : i32
    return %c0_i32, %c0_i32_0 : i32, i32
  }
  func.func @transform_13(%arg0: i32) -> (i32, i32) {
    %c0_i32 = arith.constant 0 : i32
    %c0_i32_0 = arith.constant 0 : i32
    %c0_i32_1 = arith.constant 0 : i32
    return %c0_i32, %c0_i32_0 : i32, i32
  }
  func.func @transform_14(%arg0: i32) -> i32 {
    %c0_i32 = arith.constant 0 : i32
    %c0_i32_0 = arith.constant 0 : i32
    return %c0_i32 : i32
  }
  func.func @transform_15(%arg0: i32) -> (i32, i32, i32) {
    %c0_i32 = arith.constant 0 : i32
    %c0_i32_0 = arith.constant 0 : i32
    %c0_i32_1 = arith.constant 0 : i32
    return %arg0, %c0_i32, %c0_i32_0 : i32, i32, i32
  }
}

</mosaic_0001>

<bundles_post_ra>
// kernel: tpu_custom_call.1
= control target key start
LH: loop header
LB: loop body
LE: loop exit
PB: predicated region body
PF: predicated region fallthrough
CT: control target
= control target key end

     0   :  { %20 = vsyncpa [#allocation7], 0  ;;  %s2277_s0 = inlined_call_operand.vmem [shape: f32[2,8,32], index: 0, kind: input, shape index: {}]   ;;  %s2278_s1 = inlined_call_operand.vmem [shape: f32[1,32], index: 1, kind: input, shape index: {}]   ;;  %s2279_s2 = inlined_call_operand.vmem [shape: f32[1,32], index: 2, kind: input, shape index: {}]   ;;  %s2280_s3 = inlined_call_operand.vmem [shape: bf16[96,32], index: 3, kind: input, shape index: {}]   ;;  %s2281_s4 = inlined_call_operand.vmem [shape: f32[64,1], index: 4, kind: input, shape index: {}]   ;;  %s2282_s5 = inlined_call_operand.vmem [shape: bf16[32,32], index: 5, kind: input, shape index: {}]   ;;  %s2283_s6 = inlined_call_operand.vmem [shape: f32[1,32], index: 6, kind: input, shape index: {}]   ;;  %s2284_s7 = inlined_call_operand.vmem [shape: bf16[4,8,8], index: 7, kind: input, shape index: {}]   ;;  %s2285_s8 = inlined_call_operand.vmem [shape: f32[1,32], index: 8, kind: input, shape index: {}]   ;;  %s2286_s9 = inlined_call_operand.vmem [shape: f32[1,32], index: 9, kind: input, shape index: {}]   ;;  %s2287_s10 = inlined_call_operand.vmem [shape: bf16[32,128], index: 10, kind: input, shape index: {}]   ;;  %s2288_s11 = inlined_call_operand.vmem [shape: f32[1,128], index: 11, kind: input, shape index: {}]   ;;  %s2289_s12 = inlined_call_operand.vmem [shape: bf16[128,32], index: 12, kind: input, shape index: {}]   ;;  %s2290_s13 = inlined_call_operand.vmem [shape: f32[1,32], index: 13, kind: input, shape index: {}]   ;;  %s2291_s14 = inlined_call_operand.vmem [shape: f32[2], index: 14, kind: input, shape index: {}]   ;;  %s2292_s15 = inlined_call_operand.hbm [shape: f32[2,8,32], index: 15, kind: output, shape index: {}]  }
   0x1   :  { %21 = vsyncpa [#allocation6], 0  ;;  %s55_s20 = sshll.u32 %s2291_s14, 4  ;;  %s1830_s21 = smov [#allocation5]   ;;  %s56_s20 = int_to_ptr.vmem [resolvable:$true] %s55_s20 }
   0x2   :  { %58 = dma.vmem_to_smem %s56_s20, 16, %s1830_s21, [#allocation7]  }
   0x3   :  { %1826 = dma.done.wait [#allocation7], 16  }
   0x4   :  { %1827 = vsyncadd [#allocation7], 4294967280 }
   0x5   :  { %63 = sfence }
   0x6   :  { %v65_v0 = vld [vmem:[%s2277_s0] sm:$0xff]  ;;  %vm67_vm0 = vcmask 261120   ;;  %v1831_v3 = vmov 0   ;;  %v1832_v5 = vmov 32.0   ;;  %v66_v17 = vld [vmem:[%s2277_s0 + $0x8] sm:$0xff]  ;;  %v1987_v46 = vld [vmem:[%s2281_s4 + $0x18] sm:$0xff] }
   0x7   :  { %v1926_v1 = vld [vmem:[%s2281_s4 + $0x20] sm:$0xff]  ;;  %v68_v2 = vsel %vm67_vm0, %v65_v0, 0.0  ;;  %1728 = vset.pattern.permute.xlu2 %v1831_v3  ;;  %1727 = vset.pattern.permute.xlu1 %v1831_v3  ;;  %1738 = vrcp.f32 %v1832_v5  ;;  %v71_v18 = vsel %vm67_vm0, %v66_v17, 0.0  ;;  %v1952_v24 = vld [vmem:[%s2281_s4 + $0x28] sm:$0xff]  ;;  %v236_v47 = vld [vmem:[%s2281_s4 + $0x10] sm:$0xff]  ;;  %vm290_vm5 = vcmask 64512  }
   0x8   :  { %69 = vadd.xlane.f32.xlu0 %v68_v2  ;;  %264 = vperm.xlu2 %1728, %v1926_v1   ;;  %v1935_v4 = vld [vmem:[%s2281_s4] sm:$0xff]  ;;  %v1974_v40 = vld [vmem:[%s2281_s4 + $0x8] sm:$0xff]  ;;  %v1696_v49 = vld [vmem:[%s2280_s3 + $0x10] sm:$0xff]  ;;  %vm330_vm6 = vcmask 1043456   ;;  %s2161_s14 = sld [smem:[#allocation5]] }
   0x9   :  { %269 = vperm.xlu1 %1727, %v1952_v24   ;;  %v1964_v36 = vld [vmem:[%s2278_s1] ss:$0 sm:$0xff]  ;;  %v1695_v48 = vld [vmem:[%s2280_s3 + $0x8] sm:$0xff]  ;;  %s1836_s1 = smov 8  }
   0xa   :  { %v1969_v39 = vld [vmem:[%s2279_s2] ss:$0 sm:$0xff] }
   0xb   :  { %v1694_v45 = vld [vmem:[%s2280_s3] sm:$0xff] }
   0xd   :  { %v1739_v6 = vpop.eup %1738 }
   0xe   :  { %v75_v7 = vmul.f32 32.0, %v1739_v6  ;;  %vm79_vm1 = vweird.f32 %v1739_v6 }
  0x10   :  { %244 = vperm.xlu2 %1728, %v1935_v4   ;;  %v76_v8 = vsub.f32 1.0, %v75_v7 }
  0x11   :  { %249 = vperm.xlu1 %1727, %v1974_v40  }
  0x12   :  { %v77_v9 = vmul.f32 %v1739_v6, %v76_v8 }
  0x14   :  { %v78_v10 = vadd.f32 %v1739_v6, %v77_v9 }
  0x16   :  { %v1938_v11 = vsel %vm79_vm1, %v1739_v6, %v78_v10  ;;  %v1697_v6 = vld [vmem:[%s2280_s3 + $0x18] sm:$0xff] }
  0x39   :  { %72 = vadd.xlane.f32.xlu2 %v71_v18  ;;  %v240_v18 = vld [vmem:[%s2281_s4 + $0x30] sm:$0xff] }
  0x62   :  { %v1946_v19 = vpop.permute.xlu2 %264 }
  0x6a   :  { %v245_v21 = vpop.permute.xlu2 %244 }
  0x7b   :  { %v70_v12 = vpop.xlane.xlu0 %69  ;;  %v270_v51 = vpop.permute.xlu1 %269 }
  0x7c   :  { %v81_v13 = vmul.f32 %v1938_v11, %v70_v12 }
  0x7e   :  { %v83_v14 = vsub.f32 %v65_v0, %v81_v13 }
  0x80   :  { %v85_v15 = vmul.f32 %v83_v14, %v83_v14 }
  0x82   :  { %v87_v16 = vsel %vm67_vm0, %v85_v15, 0.0 }
  0x83   :  { %88 = vadd.xlane.f32.xlu0 %v87_v16  ;;  %v250_v55 = vpop.permute.xlu1 %249 }
  0xac   :  { %v73_v25 = vpop.xlane.xlu2 %72 }
  0xad   :  { %v82_v26 = vmul.f32 %v1938_v11, %v73_v25 }
  0xaf   :  { %v1956_v28 = vsub.f32 %v66_v17, %v82_v26 }
  0xb1   :  { %v86_v30 = vmul.f32 %v1956_v28, %v1956_v28 }
  0xb3   :  { %v90_v32 = vsel %vm67_vm0, %v86_v30, 0.0 }
  0xb4   :  { %91 = vadd.xlane.f32.xlu2 %v90_v32 }
  0xcc   :  { %259 = vperm.xlu2 %1728, %v1987_v46  }
  0xd4   :  { %254 = vperm.xlu2 %1728, %v236_v47  }
  0xf6   :  { %v89_v20 = vpop.xlane.xlu0 %88 }
  0xf7   :  { %v93_v22 = vmul.f32 %v89_v20, %v1938_v11  ;;  %v808_v20 = vld [vmem:[%s2281_s4 + $0x38] sm:$0xff] }
  0xf9   :  { %v95_v23 = vadd.f32 1e-05, %v93_v22 }
  0xfb   :  { %1740 = vrsqrt.f32 %v95_v23  ;;  %vm103_vm3 = vweird.f32 %v95_v23 }
 0x101   :  { %v1741_v27 = vpop.eup %1740 }
 0x102   :  { %v98_v29 = vmul.f32 %v1741_v27, %v95_v23  ;;  %vm104_vm2 = vweird.f32 %v1741_v27 }
 0x103   :  { %vm105_vm4 = vmor %vm103_vm3, %vm104_vm2 }
 0x104   :  { %v99_v31 = vmul.f32 %v1741_v27, %v98_v29 }
 0x106   :  { %v100_v33 = vmul.f32 0.5, %v99_v31 }
 0x108   :  { %v101_v34 = vsub.f32 1.5, %v100_v33 }
 0x10a   :  { %v102_v35 = vmul.f32 %v1741_v27, %v101_v34 }
 0x10c   :  { %v106_v37 = vsel %vm105_vm4, %v1741_v27, %v102_v35 }
 0x10d   :  { %v117_v38 = vmul.f32 %v106_v37, %v83_v14 }
 0x10f   :  { %v123_v41 = vmul.f32 %v1964_v36, %v117_v38 }
 0x111   :  { %v129_v42 = vadd.f32 %v1969_v39, %v123_v41 }
 0x113   :  { %v131_v43 = vpack.c.bf16 %v129_v42, %v129_v42 }
 0x115   :  { %v193_v44 = vsel %vm67_vm0, %v131_v43, 0 }
 0x116   :  { %202 = vmatpush.bf16.xpose.msra.mxu0 %v193_v44 }
 0x11d   :  { %1576 = vmatmul.msk.bf16.vlgmr.msra.gmra.mxu0 %vm67_vm0, %v1694_v45 }
 0x127   :  { %v2001_v50 = vpop.xlane.xlu2 %91 }
 0x128   :  { %v94_v38 = vmul.f32 %v2001_v50, %v1938_v11 }
 0x12a   :  { %v96_v41 = vadd.f32 1e-05, %v94_v38  ;;  %v1703_v38 = vld [vmem:[%s2280_s3 + $0x8] sm:$0xff] }
 0x12c   :  { %1742 = vrsqrt.f32 %v96_v41  ;;  %vm113_vm7 = vweird.f32 %v96_v41 }
 0x12d   :  { %1577 = vmatmul.msk.bf16.gmra.mxu0 %vm67_vm0, %v1695_v48 }
 0x12f   :  { %v260_v54 = vpop.permute.xlu2 %259 }
 0x137   :  { %v255_v61 = vpop.permute.xlu2 %254 }
 0x13d   :  { %1578 = vmatmul.msk.bf16.gmra.mxu0 %vm67_vm0, %v1696_v49 }
 0x14d   :  { %1579 = vmatmul.msk.bf16.gmra.mxu0 %vm67_vm0, %v1697_v6 }
 0x19a   :  { %v204_v52 = vpop.f32.mrf.mxu0 }
 0x19b   :  { %v282_v53 = vadd.f32 %v245_v21, %v204_v52  ;;  %v1699_v21 = vld [vmem:[%s2280_s3 + $0x28] sm:$0xff] }
 0x19d   :  { %291 = vst.msk [vmem:[#allocation2] sm:$0xff] %vm290_vm5, %v282_v53 }
 0x1a2   :  { %v206_v56 = vpop.f32.mrf.mxu0 }
 0x1a3   :  { %v283_v57 = vadd.f32 %v250_v55, %v206_v56 }
 0x1a4   :  { %v303_v58 = vld [vmem:[#allocation2] sm:$0xff] }
 0x1a5   :  { %292 = vst.msk [vmem:[#allocation2 + $0x8] sm:$0xff] %vm290_vm5, %v283_v57  ;;  %v304_v59 = vpack.c.bf16 %v303_v58, %v303_v58 }
 0x1a7   :  { %v332_v60 = vsel %vm330_vm6, %v304_v59, 0 }
 0x1a8   :  { %341 = vmatpush.bf16.msrb.mxu0 %v332_v60 }
 0x1aa   :  { %v209_v62 = vpop.f32.mrf.mxu0 }
 0x1ab   :  { %v284_v63 = vadd.f32 %v255_v61, %v209_v62 }
 0x1ac   :  { %v387_v0 = vld [vmem:[#allocation2 + $0x8] sm:$0xff] }
 0x1ad   :  { %293 = vst.msk [vmem:[#allocation2 + $0x10] sm:$0xff] %vm290_vm5, %v284_v63  ;;  %v388_v2 = vpack.c.bf16 %v387_v0, %v387_v0 }
 0x1af   :  { %v416_v5 = vsel %vm330_vm6, %v388_v2, 0 }
 0x1b0   :  { %425 = vmatpush.bf16.msra.mxu3 %v416_v5 }
 0x1b2   :  { %v211_v7 = vpop.f32.mrf.mxu0 }
 0x1b3   :  { %v285_v8 = vadd.f32 %v260_v54, %v211_v7 }
 0x1b4   :  { %v471_v7 = vld [vmem:[#allocation2 + $0x10] sm:$0xff] }
 0x1b5   :  { %294 = vst.msk [vmem:[#allocation2 + $0x18] sm:$0xff] %vm290_vm5, %v285_v8 }
 0x1ba   :  { %v214_v9 = vpop.f32.mrf.mxu0 }
 0x1bb   :  { %v286_v10 = vadd.f32 %v1946_v19, %v214_v9  ;;  %v1698_v19 = vld [vmem:[%s2280_s3 + $0x20] sm:$0xff] }
 0x1bc   :  { %1580 = vmatmul.msk.bf16.gmra.mxu0 %vm67_vm0, %v1698_v19 }
 0x1bd   :  { %295 = vst.msk [vmem:[#allocation2 + $0x20] sm:$0xff] %vm290_vm5, %v286_v10 }
 0x1c2   :  { %v216_v12 = vpop.f32.mrf.mxu0 }
 0x1c3   :  { %v287_v13 = vadd.f32 %v270_v51, %v216_v12 }
 0x1c4   :  { %v305_v14 = vld [vmem:[#allocation2 + $0x20] sm:$0xff] }
 0x1c5   :  { %296 = vst.msk [vmem:[#allocation2 + $0x28] sm:$0xff] %vm290_vm5, %v287_v13  ;;  %v306_v15 = vpack.c.bf16 %v305_v14, %v305_v14  ;;  %v472_v13 = vpack.c.bf16 %v471_v7, %v471_v7 }
 0x1c7   :  { %311 = vxpose.xlu1.c.b16.start.end [1/1] (short) (narrow) %v306_v15, 16 }
 0x1cc   :  { %v389_v16 = vld [vmem:[#allocation2 + $0x28] sm:$0xff]  ;;  %1581 = vmatmul.msk.bf16.gmra.mxu0 %vm67_vm0, %v1699_v21  ;;  %v500_v21 = vsel %vm330_vm6, %v472_v13, 0 }
 0x1cd   :  { %v390_v17 = vpack.c.bf16 %v389_v16, %v389_v16 }
 0x1cf   :  { %396 = vxpose.xlu0.c.b16.start.end [1/1] (short) (narrow) %v390_v17, 16 }
 0x221   :  { %274 = vperm.xlu1 %1727, %v240_v18  }
 0x229   :  { %836 = vperm.xlu1 %1727, %v1952_v24  }
 0x231   :  { %841 = vperm.xlu1 %1727, %v240_v18  }
 0x236   :  { %1729 = vset.pattern.permute.xlu0 %v1831_v3  ;;  %v219_v3 = vpop.f32.mrf.mxu0 }
 0x239   :  { %846 = vperm.xlu1 %1727, %v808_v20  }
 0x23d   :  { %279 = vperm.xlu0 %1729, %v808_v20  }
 0x23e   :  { %v221_v26 = vpop.f32.mrf.mxu0 }
 0x245   :  { %811 = vperm.xlu0 %1729, %v1935_v4  }
 0x246   :  { %v224_v29 = vpop.f32.mrf.mxu0 }
 0x247   :  { %299 = vst.msk [vmem:[#allocation2 + $0x40] sm:$0xff] %vm290_vm5, %v224_v29 }
 0x24d   :  { %816 = vperm.xlu0 %1729, %v1974_v40   ;;  %v309_v40 = vld [vmem:[%s2284_s7] sm:$0xff]  }
 0x24e   :  { %v226_v30 = vpop.f32.mrf.mxu0  ;;  %v310_v42 = vunpack.c.l.bf16 %v309_v40  ;;  %v395_v54 = vunpack.c.h.bf16 %v309_v40  ;;  %v307_v14 = vld [vmem:[#allocation2 + $0x40] sm:$0xff] }
 0x24f   :  { %300 = vst.msk [vmem:[#allocation2 + $0x48] sm:$0xff] %vm290_vm5, %v226_v30  ;;  %v308_v19 = vpack.c.bf16 %v307_v14, %v307_v14 }
 0x255   :  { %821 = vperm.xlu0 %1729, %v236_v47   ;;  %v1743_v47 = vpop.eup %1742 }
 0x256   :  { %v229_v33 = vpop.f32.mrf.mxu0  ;;  %v108_v49 = vmul.f32 %v1743_v47, %v96_v41  ;;  %vm114_vm8 = vweird.f32 %v1743_v47  ;;  %v391_v29 = vld [vmem:[#allocation2 + $0x48] sm:$0xff] }
 0x257   :  { %301 = vst.msk [vmem:[#allocation2 + $0x50] sm:$0xff] %vm290_vm5, %v229_v33  ;;  %vm115_vm9 = vmor %vm113_vm7, %vm114_vm8 }
 0x258   :  { %v109_v50 = vmul.f32 %v1743_v47, %v108_v49 }
 0x25a   :  { %v110_v59 = vmul.f32 0.5, %v109_v50 }
 0x25c   :  { %v111_v0 = vsub.f32 1.5, %v110_v59 }
 0x25d   :  { %826 = vperm.xlu0 %1729, %v1987_v46  }
 0x25e   :  { %v231_v35 = vpop.f32.mrf.mxu0  ;;  %v112_v8 = vmul.f32 %v1743_v47, %v111_v0 }
 0x25f   :  { %302 = vst.msk [vmem:[#allocation2 + $0x58] sm:$0xff] %vm290_vm5, %v231_v35 }
 0x260   :  { %v116_v16 = vsel %vm115_vm9, %v1743_v47, %v112_v8  ;;  %v1704_v47 = vld [vmem:[%s2280_s3 + $0x10] sm:$0xff] }
 0x273   :  { %v319_v22 = vpop.trf.xlu1 }
 0x274   :  { %1582 = vmatmul.msk.bf16.vlgmr.msrb.gmra.mxu0 %vm290_vm5, %v319_v22  ;;  %v118_v22 = vmul.f32 %v116_v16, %v1956_v28 }
 0x27b   :  { %v404_v23 = vpop.trf.xlu0 }
 0x27c   :  { %1585 = vmatmul.msk.bf16.vlgmr.msra.gmra.mxu3 %vm290_vm5, %v404_v23 }
 0x293   :  { %v275_v24 = vpop.permute.xlu1 %274 }
 0x294   :  { %v288_v25 = vadd.f32 %v275_v24, %v219_v3  ;;  %v124_v3 = vmul.f32 %v1964_v36, %v118_v22  ;;  %v555_v24 = vld [vmem:[#allocation2 + $0x18] sm:$0xff] }
 0x296   :  { %297 = vst.msk [vmem:[#allocation2 + $0x30] sm:$0xff] %vm290_vm5, %v288_v25  ;;  %v130_v25 = vadd.f32 %v1969_v39, %v124_v3  ;;  %v1702_v39 = vld [vmem:[%s2280_s3] sm:$0xff] }
 0x29d   :  { %v473_v34 = vld [vmem:[#allocation2 + $0x30] sm:$0xff] }
 0x29e   :  { %v474_v37 = vpack.c.bf16 %v473_v34, %v473_v34 }
 0x2af   :  { %v280_v27 = vpop.permute.xlu0 %279 }
 0x2b0   :  { %v289_v4 = vadd.f32 %v280_v27, %v221_v26  ;;  %v556_v27 = vpack.c.bf16 %v555_v24, %v555_v24 }
 0x2b2   :  { %298 = vst.msk [vmem:[#allocation2 + $0x38] sm:$0xff] %vm290_vm5, %v289_v4  ;;  %v584_v28 = vsel %vm330_vm6, %v556_v27, 0 }
 0x2b9   :  { %v557_v31 = vld [vmem:[#allocation2 + $0x38] sm:$0xff] }
 0x2ba   :  { %v558_v32 = vpack.c.bf16 %v557_v31, %v557_v31  ;;  %v392_v31 = vpack.c.bf16 %v391_v29, %v391_v29 }
 0x2bc   :  { %564 = vxpose.xlu2.c.b16.start.end [1/1] (short) (narrow) %v558_v32, 16  ;;  %v698_v32 = vpack.c.bf16 %v130_v25, %v130_v25 }
 0x2be   :  { %v760_v33 = vsel %vm67_vm0, %v698_v32, 0 }
 0x2cc   :  { %480 = vxpose.xlu2.c.b16.start.end [1/1] (short) (narrow) %v474_v37, 16 }
 0x2f1   :  { %v343_v43 = vpop.f32.mrf.mxu0 }
 0x2f2   :  { %v344_v44 = vadd.f32 %v343_v43, %v310_v42 }
 0x2f4   :  { %v347_v45 = vsel %vm290_vm5, %v344_v44, -inf }
 0x2f5   :  { %v348_v46 = vrot.slane %v347_v45, 4 }
 0x2f7   :  { %v349_v48 = vmax.f32 %v347_v45, %v348_v46 }
 0x2f9   :  { %v350_v51 = vrot.slane %v349_v48, 2  ;;  %v345_v52 = vpop.f32.mrf.mxu0 }
 0x2fb   :  { %v351_v53 = vmax.f32 %v349_v48, %v350_v51 }
 0x2fd   :  { %v352_v55 = vrot.slane %v351_v53, 1 }
 0x2ff   :  { %v353_v56 = vmax.f32 %v351_v53, %v352_v55  ;;  %v427_v57 = vpop.f32.mrf.mxu3  ;;  %v1705_v55 = vld [vmem:[%s2280_s3 + $0x18] sm:$0xff] }
 0x300   :  { %v428_v58 = vadd.f32 %v427_v57, %v395_v54 }
 0x301   :  { %v354_v60 = vsub.f32 %v344_v44, %v353_v56 }
 0x302   :  { %v431_v61 = vsel %vm290_vm5, %v428_v58, -inf }
 0x303   :  { %v355_v62 = vmul.f32 1.442695, %v354_v60  ;;  %v432_v63 = vrot.slane %v431_v61, 4 }
 0x305   :  { %1744 = vpow2.f32 %v355_v62  ;;  %v433_v2 = vmax.f32 %v431_v61, %v432_v63  ;;  %v1590_v61 = vld [vmem:[%s2284_s7 + $0x8] sm:$0xff]  }
 0x306   :  { %v563_v62 = vunpack.c.h.bf16 %v1590_v61 }
 0x307   :  { %v434_v5 = vrot.slane %v433_v2, 2  ;;  %v429_v6 = vpop.f32.mrf.mxu3 }
 0x309   :  { %v435_v9 = vmax.f32 %v433_v2, %v434_v5 }
 0x30b   :  { %v1745_v10 = vpop.eup %1744  ;;  %v436_v12 = vrot.slane %v435_v9, 1 }
 0x30c   :  { %v364_v15 = vpack.c.bf16 %v1745_v10, %v1745_v10  ;;  %v357_v35 = vsel %vm290_vm5, %v1745_v10, 0.0 }
 0x30d   :  { %v437_v17 = vmax.f32 %v435_v9, %v436_v12  ;;  %v358_v37 = vrot.slane %v357_v35, 4  ;;  %v812_v9 = vpop.permute.xlu0 %811 }
 0x30e   :  { %v369_v18 = vsel %vm330_vm6, %v364_v15, 0 }
 0x30f   :  { %v438_v20 = vsub.f32 %v428_v58, %v437_v17  ;;  %378 = vmatpush.bf16.msra.mxu2 %v369_v18  ;;  %v479_v18 = vunpack.c.l.bf16 %v1590_v61 }
 0x311   :  { %v439_v23 = vmul.f32 1.442695, %v438_v20 }
 0x312   :  { %1583 = vmatmul.msk.bf16.vlgmr.msra.gmra.mxu2 %vm290_vm5, %v308_v19 }
 0x313   :  { %509 = vmatpush.bf16.msrb.mxu2 %v500_v21  ;;  %1746 = vpow2.f32 %v439_v23 }
 0x315   :  { %v817_v19 = vpop.permute.xlu0 %816 }
 0x319   :  { %v1747_v26 = vpop.eup %1746 }
 0x31a   :  { %v448_v4 = vpack.c.bf16 %v1747_v26, %v1747_v26  ;;  %v441_v40 = vsel %vm290_vm5, %v1747_v26, 0.0 }
 0x31b   :  { %v442_v41 = vrot.slane %v441_v40, 4 }
 0x31c   :  { %v453_v30 = vsel %vm330_vm6, %v448_v4, 0 }
 0x31d   :  { %462 = vmatpush.bf16.msra.mxu1 %v453_v30  ;;  %v443_v43 = vadd.f32 %v442_v41, %v441_v40  ;;  %v559_v30 = vld [vmem:[#allocation2 + $0x58] sm:$0xff] }
 0x31f   :  { %v444_v46 = vrot.slane %v443_v43, 2 }
 0x320   :  { %1586 = vmatmul.msk.bf16.vlgmr.msra.gmra.mxu1 %vm290_vm5, %v392_v31 }
 0x321   :  { %593 = vmatpush.bf16.msrb.mxu1 %v584_v28  ;;  %v445_v49 = vadd.f32 %v444_v46, %v443_v43  ;;  %v822_v28 = vpop.permute.xlu0 %821 }
 0x323   :  { %v446_v51 = vrot.slane %v445_v49, 1 }
 0x325   :  { %769 = vmatpush.bf16.xpose.msra.mxu1 %v760_v33  ;;  %v447_v52 = vadd.f32 %v446_v51, %v445_v49 }
 0x335   :  { %831 = vperm.xlu2 %1728, %v1926_v1   ;;  %v359_v1 = vadd.f32 %v358_v37, %v357_v35 }
 0x337   :  { %v360_v42 = vrot.slane %v359_v1, 2 }
 0x339   :  { %v361_v44 = vadd.f32 %v360_v42, %v359_v1 }
 0x33b   :  { %v362_v45 = vrot.slane %v361_v44, 1 }
 0x33d   :  { %v363_v48 = vadd.f32 %v362_v45, %v361_v44  ;;  %v827_v44 = vpop.permute.xlu0 %826 }
 0x33f   :  { %1748 = vrcp.f32 %v363_v48 }
 0x340   :  { %1750 = vrcp.f32 %v447_v52 }
 0x345   :  { %v1749_v53 = vpop.eup %1748 }
 0x346   :  { %v1751_v56 = vpop.eup %1750 }
 0x35d   :  { %v572_v36 = vpop.trf.xlu2 }
 0x35e   :  { %1591 = vmatmul.msk.bf16.vlgmr.msrb.gmra.mxu1 %vm290_vm5, %v572_v36 }
 0x36d   :  { %v488_v34 = vpop.trf.xlu2 }
 0x36e   :  { %1588 = vmatmul.msk.bf16.vlgmr.msrb.gmra.mxu2 %vm290_vm5, %v488_v34  ;;  %1626 = vmatmul.msk.bf16.vlgmr.msra.gmra.mxu1 %vm67_vm0, %v1702_v39  ;;  %v560_v39 = vpack.c.bf16 %v559_v30, %v559_v30 }
 0x37e   :  { %1627 = vmatmul.msk.bf16.gmra.mxu1 %vm67_vm0, %v1703_v38 }
 0x38e   :  { %1628 = vmatmul.msk.bf16.gmra.mxu1 %vm67_vm0, %v1704_v47 }
 0x38f   :  { %v832_v49 = vpop.permute.xlu2 %831 }
 0x395   :  { %v380_v54 = vpop.f32.mrf.mxu2 }
 0x396   :  { %v385_v50 = vmul.f32 %v1749_v53, %v380_v54  ;;  %v475_v54 = vld [vmem:[#allocation2 + $0x50] sm:$0xff] }
 0x398   :  { %386 = vst.msk [vmem:[#allocation3] sm:$0xff] %vm290_vm5, %v385_v50 }
 0x39d   :  { %v464_v57 = vpop.f32.mrf.mxu1  ;;  %v382_v58 = vpop.f32.mrf.mxu2 }
 0x39e   :  { %v469_v59 = vmul.f32 %v1751_v56, %v464_v57  ;;  %1629 = vmatmul.msk.bf16.gmra.mxu1 %vm67_vm0, %v1705_v55  ;;  %v837_v55 = vpop.permute.xlu1 %836  ;;  %v476_v56 = vpack.c.bf16 %v475_v54, %v475_v54 }
 0x3a0   :  { %470 = vst.msk [vmem:[#allocation3 + $0x8] sm:$0xff] %vm290_vm5, %v469_v59 }
 0x3a5   :  { %v466_v60 = vpop.f32.mrf.mxu1 }
 0x3a6   :  { %v842_v61 = vpop.permute.xlu1 %841 }
 0x3db   :  { %v595_v63 = vpop.f32.mrf.mxu1 }
 0x3dc   :  { %v596_v0 = vadd.f32 %v595_v63, %v563_v62 }
 0x3de   :  { %v599_v2 = vsel %vm290_vm5, %v596_v0, -inf }
 0x3df   :  { %v600_v5 = vrot.slane %v599_v2, 4 }
 0x3e1   :  { %v601_v6 = vmax.f32 %v599_v2, %v600_v5  ;;  %v847_v5 = vpop.permute.xlu1 %846 }
 0x3e3   :  { %v602_v7 = vrot.slane %v601_v6, 2  ;;  %v597_v8 = vpop.f32.mrf.mxu1 }
 0x3e5   :  { %v603_v10 = vmax.f32 %v601_v6, %v602_v7 }
 0x3e7   :  { %v604_v12 = vrot.slane %v603_v10, 1 }
 0x3e9   :  { %v605_v13 = vmax.f32 %v603_v10, %v604_v12 }
 0x3eb   :  { %v606_v14 = vsub.f32 %v596_v0, %v605_v13  ;;  %v771_v15 = vpop.f32.mrf.mxu1  ;;  %v640_v13 = vld [vmem:[#allocation3 + $0x8] sm:$0xff] }
 0x3ec   :  { %v849_v16 = vadd.f32 %v812_v9, %v771_v15 }
 0x3ed   :  { %v607_v17 = vmul.f32 1.442695, %v606_v14  ;;  %v639_v14 = vld [vmem:[#allocation3] sm:$0xff] }
 0x3ee   :  { %857 = vst.msk [vmem:[#allocation2] sm:$0xff] %vm290_vm5, %v849_v16  ;;  %v643_v15 = vpack.c.bf16 %v640_v13, %v639_v14 }
 0x3ef   :  { %1752 = vpow2.f32 %v607_v17 }
 0x3f1   :  { %v511_v20 = vpop.f32.mrf.mxu2 }
 0x3f2   :  { %v512_v21 = vadd.f32 %v511_v20, %v479_v18 }
 0x3f3   :  { %v773_v22 = vpop.f32.mrf.mxu1 }
 0x3f4   :  { %v515_v23 = vsel %vm290_vm5, %v512_v21, -inf  ;;  %v850_v3 = vadd.f32 %v817_v19, %v773_v22 }
 0x3f5   :  { %v2089_v24 = vpop.eup %1752  ;;  %v516_v25 = vrot.slane %v515_v23, 4  ;;  %v869_v26 = vld [vmem:[#allocation2] sm:$0xff] }
 0x3f6   :  { %858 = vst.msk [vmem:[#allocation2 + $0x8] sm:$0xff] %vm290_vm5, %v850_v3  ;;  %v616_v27 = vpack.c.bf16 %v2089_v24, %v2089_v24  ;;  %v870_v29 = vpack.c.bf16 %v869_v26, %v869_v26  ;;  %v609_v16 = vsel %vm290_vm5, %v2089_v24, 0.0 }
 0x3f7   :  { %v517_v4 = vmax.f32 %v515_v23, %v516_v25  ;;  %v610_v17 = vrot.slane %v609_v16, 4 }
 0x3f8   :  { %v621_v31 = vsel %vm330_vm6, %v616_v27, 0  ;;  %v897_v32 = vsel %vm330_vm6, %v870_v29, 0 }
 0x3f9   :  { %v518_v33 = vrot.slane %v517_v4, 2  ;;  %630 = vmatpush.bf16.msra.mxu2 %v621_v31  ;;  %v513_v36 = vpop.f32.mrf.mxu2  ;;  %v611_v18 = vadd.f32 %v610_v17, %v609_v16 }
 0x3fb   :  { %v519_v34 = vmax.f32 %v517_v4, %v518_v33  ;;  %v776_v35 = vpop.f32.mrf.mxu1  ;;  %v612_v19 = vrot.slane %v611_v18, 2 }
 0x3fc   :  { %v851_v37 = vadd.f32 %v822_v28, %v776_v35  ;;  %1592 = vmatmul.msk.bf16.vlgmr.msra.gmra.mxu2 %vm290_vm5, %v560_v39 }
 0x3fd   :  { %906 = vmatpush.bf16.msrb.mxu2 %v897_v32  ;;  %v520_v38 = vrot.slane %v519_v34, 1  ;;  %v952_v1 = vld [vmem:[#allocation2 + $0x8] sm:$0xff]  ;;  %v613_v20 = vadd.f32 %v612_v19, %v611_v18 }
 0x3fe   :  { %859 = vst.msk [vmem:[#allocation2 + $0x10] sm:$0xff] %vm290_vm5, %v851_v37  ;;  %v953_v40 = vpack.c.bf16 %v952_v1, %v952_v1 }
 0x3ff   :  { %v521_v41 = vmax.f32 %v519_v34, %v520_v38  ;;  %v1706_v38 = vld [vmem:[%s2280_s3 + $0x20] sm:$0xff] }
 0x400   :  { %v980_v42 = vsel %vm330_vm6, %v953_v40, 0  ;;  %1630 = vmatmul.msk.bf16.gmra.mxu1 %vm67_vm0, %v1706_v38 }
 0x401   :  { %v522_v43 = vsub.f32 %v512_v21, %v521_v41  ;;  %989 = vmatpush.bf16.msra.mxu2 %v980_v42  ;;  %v614_v21 = vrot.slane %v613_v20, 1 }
 0x403   :  { %v523_v45 = vmul.f32 1.442695, %v522_v43  ;;  %v778_v46 = vpop.f32.mrf.mxu1  ;;  %v615_v23 = vadd.f32 %v614_v21, %v613_v20  ;;  %v1637_v21 = vld [vmem:[%s2284_s7 + $0x8] sm:$0xff]  }
 0x404   :  { %v852_v47 = vadd.f32 %v827_v44, %v778_v46 }
 0x405   :  { %1754 = vpow2.f32 %v523_v45  ;;  %v1035_v1 = vld [vmem:[#allocation2 + $0x10] sm:$0xff] }
 0x406   :  { %860 = vst.msk [vmem:[#allocation2 + $0x18] sm:$0xff] %vm290_vm5, %v852_v47  ;;  %1756 = vrcp.f32 %v615_v23  ;;  %v1036_v40 = vpack.c.bf16 %v1035_v1, %v1035_v1  ;;  %v1707_v47 = vld [vmem:[%s2280_s3 + $0x28] sm:$0xff] }
 0x408   :  { %v1063_v42 = vsel %vm330_vm6, %v1036_v40, 0 }
 0x40b   :  { %v1755_v48 = vpop.eup %1754  ;;  %v781_v51 = vpop.f32.mrf.mxu1 }
 0x40c   :  { %v853_v52 = vadd.f32 %v832_v49, %v781_v51  ;;  %v532_v53 = vpack.c.bf16 %v1755_v48, %v1755_v48  ;;  %v525_v22 = vsel %vm290_vm5, %v1755_v48, 0.0  ;;  %v1757_v26 = vpop.eup %1756  ;;  %v1701_v48 = vld [vmem:[%s2282_s5 + $0x8] sm:$0xff]  ;;  %v1700_v49 = vld [vmem:[%s2282_s5] sm:$0xff] }
 0x40d   :  { %v526_v3 = vrot.slane %v525_v22, 4  ;;  %v1118_v43 = vld [vmem:[#allocation2 + $0x18] sm:$0xff] }
 0x40e   :  { %861 = vst.msk [vmem:[#allocation2 + $0x20] sm:$0xff] %vm290_vm5, %v853_v52  ;;  %v537_v50 = vsel %vm330_vm6, %v532_v53, 0  ;;  %v1119_v44 = vpack.c.bf16 %v1118_v43, %v1118_v43 }
 0x40f   :  { %546 = vmatpush.bf16.msrb.mxu3 %v537_v50  ;;  %v527_v25 = vadd.f32 %v526_v3, %v525_v22 }
 0x410   :  { %v1146_v46 = vsel %vm330_vm6, %v1119_v44, 0  ;;  %1631 = vmatmul.msk.bf16.gmra.mxu1 %vm67_vm0, %v1707_v47 }
 0x411   :  { %v528_v29 = vrot.slane %v527_v25, 2 }
 0x412   :  { %1589 = vmatmul.msk.bf16.vlgmr.msrb.gmra.mxu3 %vm290_vm5, %v476_v56 }
 0x413   :  { %v783_v57 = vpop.f32.mrf.mxu1  ;;  %v529_v30 = vadd.f32 %v528_v29, %v527_v25  ;;  %690 = vmatpush.bf16.msra.mxu3 %v1701_v48 }
 0x414   :  { %v854_v58 = vadd.f32 %v837_v55, %v783_v57  ;;  %v875_v55 = vld [vmem:[%s2284_s7] sm:$0xff]  }
 0x415   :  { %v871_v59 = vld [vmem:[#allocation2 + $0x20] sm:$0xff]  ;;  %v530_v24 = vrot.slane %v529_v30, 1  ;;  %v876_v56 = vunpack.c.l.bf16 %v875_v55 }
 0x416   :  { %862 = vst.msk [vmem:[#allocation2 + $0x28] sm:$0xff] %vm290_vm5, %v854_v58  ;;  %v872_v60 = vpack.c.bf16 %v871_v59, %v871_v59 }
 0x417   :  { %v531_v32 = vadd.f32 %v530_v24, %v529_v30  ;;  %691 = vmatpush.bf16.msra.mxu3 %v1700_v49 }
 0x418   :  { %877 = vxpose.xlu1.c.b16.start.end [1/1] (short) (narrow) %v872_v60, 16 }
 0x419   :  { %1758 = vrcp.f32 %v531_v32 }
 0x41b   :  { %v786_v62 = vpop.f32.mrf.mxu1 }
 0x41c   :  { %v855_v63 = vadd.f32 %v842_v61, %v786_v62 }
 0x41d   :  { %v954_v0 = vld [vmem:[#allocation2 + $0x28] sm:$0xff] }
 0x41e   :  { %863 = vst.msk [vmem:[#allocation2 + $0x30] sm:$0xff] %vm290_vm5, %v855_v63  ;;  %v955_v2 = vpack.c.bf16 %v954_v0, %v954_v0 }
 0x41f   :  { %v1759_v28 = vpop.eup %1758 }
 0x420   :  { %960 = vxpose.xlu0.c.b16.start.end [1/1] (short) (narrow) %v955_v2, 16 }
 0x423   :  { %v788_v6 = vpop.f32.mrf.mxu1 }
 0x424   :  { %v856_v7 = vadd.f32 %v847_v5, %v788_v6  ;;  %v959_v5 = vunpack.c.h.bf16 %v875_v55 }
 0x425   :  { %v1037_v8 = vld [vmem:[#allocation2 + $0x30] sm:$0xff] }
 0x426   :  { %864 = vst.msk [vmem:[#allocation2 + $0x38] sm:$0xff] %vm290_vm5, %v856_v7  ;;  %v1038_v10 = vpack.c.bf16 %v1037_v8, %v1037_v8 }
 0x42d   :  { %v1120_v9 = vld [vmem:[#allocation2 + $0x38] sm:$0xff] }
 0x42e   :  { %v1121_v12 = vpack.c.bf16 %v1120_v9, %v1120_v9 }
 0x430   :  { %1043 = vxpose.xlu0.c.b16.start.end [1/1] (short) (narrow) %v1038_v10, 16  ;;  %1126 = vxpose.xlu1.c.b16.start.end [1/1] (short) (narrow) %v1121_v12, 16 }
 0x440   :  { %653 = vxpose.xlu0.c.b16.start [1/2] (short) (narrow) %v643_v15, 16 }
 0x47d   :  { %v791_v53 = vpop.f32.mrf.mxu1 }
 0x47e   :  { %865 = vst.msk [vmem:[#allocation2 + $0x40] sm:$0xff] %vm290_vm5, %v791_v53 }
 0x47f   :  { %v632_v27 = vpop.f32.mrf.mxu2 }
 0x480   :  { %v637_v4 = vmul.f32 %v1757_v26, %v632_v27  ;;  %v1042_v26 = vunpack.c.l.bf16 %v1637_v21 }
 0x482   :  { %638 = vst.msk [vmem:[#allocation3 + $0x18] sm:$0xff] %vm290_vm5, %v637_v4 }
 0x485   :  { %v793_v50 = vpop.f32.mrf.mxu1  ;;  %v873_v22 = vld [vmem:[#allocation2 + $0x40] sm:$0xff] }
 0x486   :  { %866 = vst.msk [vmem:[#allocation2 + $0x48] sm:$0xff] %vm290_vm5, %v793_v50  ;;  %v874_v27 = vpack.c.bf16 %v873_v22, %v873_v22 }
 0x487   :  { %v634_v31 = vpop.f32.mrf.mxu2 }
 0x489   :  { %v642_v35 = vld [vmem:[#allocation3 + $0x18] sm:$0xff] }
 0x48d   :  { %v796_v7 = vpop.f32.mrf.mxu1  ;;  %v956_v1 = vld [vmem:[#allocation2 + $0x48] sm:$0xff] }
 0x48e   :  { %867 = vst.msk [vmem:[#allocation2 + $0x50] sm:$0xff] %vm290_vm5, %v796_v7  ;;  %v957_v43 = vpack.c.bf16 %v956_v1, %v956_v1  ;;  %v1732_v7 = vld [vmem:[%s2283_s6] ss:$0 sm:$0xff] }
 0x495   :  { %v548_v33 = vpop.f32.mrf.mxu3  ;;  %v798_v16 = vpop.f32.mrf.mxu1  ;;  %v1039_v55 = vld [vmem:[#allocation2 + $0x50] sm:$0xff] }
 0x496   :  { %v553_v36 = vmul.f32 %v1759_v28, %v548_v33  ;;  %868 = vst.msk [vmem:[#allocation2 + $0x58] sm:$0xff] %vm290_vm5, %v798_v16 }
 0x498   :  { %554 = vst.msk [vmem:[#allocation3 + $0x10] sm:$0xff] %vm290_vm5, %v553_v36 }
 0x49d   :  { %v550_v39 = vpop.f32.mrf.mxu3 }
 0x49f   :  { %v641_v34 = vld [vmem:[#allocation3 + $0x10] sm:$0xff] }
 0x4a0   :  { %v644_v37 = vpack.c.bf16 %v642_v35, %v641_v34 }
 0x4a2   :  { %654 = vxpose.xlu0.c.b16.end [2/2] (short) (narrow) %v644_v37, 16 }
 0x4c4   :  { %v885_v41 = vpop.trf.xlu1 }
 0x4c5   :  { %1632 = vmatmul.msk.bf16.vlgmr.msrb.gmra.mxu2 %vm290_vm5, %v885_v41  ;;  %v1125_v41 = vunpack.c.h.bf16 %v1637_v21 }
 0x4c6   :  { %1072 = vmatpush.bf16.msrb.mxu2 %v1063_v42 }
 0x4cc   :  { %v968_v45 = vpop.trf.xlu0 }
 0x4d5   :  { %1635 = vmatmul.msk.bf16.vlgmr.msra.gmra.mxu2 %vm290_vm5, %v968_v45 }
 0x4d6   :  { %1155 = vmatpush.bf16.msra.mxu2 %v1146_v46 }
 0x4dc   :  { %v1051_v51 = vpop.trf.xlu0  ;;  %v1134_v52 = vpop.trf.xlu1 }
 0x4e5   :  { %1638 = vmatmul.msk.bf16.vlgmr.msrb.gmra.mxu2 %vm290_vm5, %v1051_v51 }
 0x4f5   :  { %1641 = vmatmul.msk.bf16.vlgmr.msra.gmra.mxu2 %vm290_vm5, %v1134_v52 }
 0x53e   :  { %v661_v54 = vpop.trf.xlu0 }
 0x53f   :  { %1601 = vmatmul.msk.bf16.vlgmr.msra.gmra.mxu3 %vm67_vm0, %v661_v54 }
 0x548   :  { %v908_v57 = vpop.f32.mrf.mxu2 }
 0x549   :  { %v909_v58 = vadd.f32 %v908_v57, %v876_v56 }
 0x54b   :  { %v912_v59 = vsel %vm290_vm5, %v909_v58, -inf }
 0x54c   :  { %v913_v60 = vrot.slane %v912_v59, 4 }
 0x54e   :  { %v914_v61 = vmax.f32 %v912_v59, %v913_v60  ;;  %v1040_v59 = vpack.c.bf16 %v1039_v55, %v1039_v55 }
 0x550   :  { %v915_v62 = vrot.slane %v914_v61, 2  ;;  %v910_v63 = vpop.f32.mrf.mxu2 }
 0x552   :  { %v916_v0 = vmax.f32 %v914_v61, %v915_v62 }
 0x554   :  { %v917_v2 = vrot.slane %v916_v0, 1 }
 0x556   :  { %v918_v6 = vmax.f32 %v916_v0, %v917_v2  ;;  %v1122_v2 = vld [vmem:[#allocation2 + $0x58] sm:$0xff] }
 0x558   :  { %v919_v8 = vsub.f32 %v909_v58, %v918_v6  ;;  %v991_v9 = vpop.f32.mrf.mxu2  ;;  %v1123_v6 = vpack.c.bf16 %v1122_v2, %v1122_v2  ;;  %v1709_v2 = vld [vmem:[%s2282_s5 + $0x8] sm:$0xff] }
 0x559   :  { %v992_v10 = vadd.f32 %v991_v9, %v959_v5  ;;  %1252 = vmatpush.bf16.msra.mxu0 %v1709_v2 }
 0x55a   :  { %v920_v12 = vmul.f32 1.442695, %v919_v8 }
 0x55b   :  { %v995_v13 = vsel %vm290_vm5, %v992_v10, -inf }
 0x55c   :  { %1760 = vpow2.f32 %v920_v12  ;;  %v996_v14 = vrot.slane %v995_v13, 4 }
 0x55e   :  { %v997_v15 = vmax.f32 %v995_v13, %v996_v14 }
 0x560   :  { %v998_v17 = vrot.slane %v997_v15, 2  ;;  %v993_v18 = vpop.f32.mrf.mxu2 }
 0x562   :  { %v2141_v19 = vpop.eup %1760  ;;  %v999_v20 = vmax.f32 %v997_v15, %v998_v17  ;;  %v1788_v17 = vld [vmem:[%s2277_s0] sm:$0xff] }
 0x563   :  { %v929_v23 = vpack.c.bf16 %v2141_v19, %v2141_v19  ;;  %v922_v13 = vsel %vm290_vm5, %v2141_v19, 0.0 }
 0x564   :  { %v1000_v3 = vrot.slane %v999_v20, 1  ;;  %v923_v16 = vrot.slane %v922_v13, 4 }
 0x565   :  { %v934_v25 = vsel %vm330_vm6, %v929_v23, 0 }
 0x566   :  { %v1001_v29 = vmax.f32 %v999_v20, %v1000_v3  ;;  %943 = vmatpush.bf16.msrb.mxu3 %v934_v25  ;;  %v924_v21 = vadd.f32 %v923_v16, %v922_v13 }
 0x568   :  { %v1002_v4 = vsub.f32 %v992_v10, %v1001_v29  ;;  %v1074_v30 = vpop.f32.mrf.mxu2  ;;  %v1264_v10 = vstv %s2161_s14  ;;  %v925_v22 = vrot.slane %v924_v21, 2 }
 0x569   :  { %v1075_v31 = vadd.f32 %v1074_v30, %v1042_v26  ;;  %1633 = vmatmul.msk.bf16.vlgmr.msrb.gmra.mxu3 %vm290_vm5, %v874_v27 }
 0x56a   :  { %v1003_v24 = vmul.f32 1.442695, %v1002_v4  ;;  %v926_v23 = vadd.f32 %v925_v22, %v924_v21  ;;  %v1789_v22 = vld [vmem:[%s2277_s0 + $0x8] sm:$0xff]  ;;  %s1834_s0 = smov [#allocation8]  }
 0x56b   :  { %v1078_v32 = vsel %vm290_vm5, %v1075_v31, -inf }
 0x56c   :  { %1762 = vpow2.f32 %v1003_v24  ;;  %v1079_v28 = vrot.slane %v1078_v32, 4  ;;  %v927_v25 = vrot.slane %v926_v23, 1 }
 0x56e   :  { %v1080_v33 = vmax.f32 %v1078_v32, %v1079_v28  ;;  %v928_v27 = vadd.f32 %v927_v25, %v926_v23 }
 0x570   :  { %v1081_v36 = vrot.slane %v1080_v33, 2  ;;  %v1076_v39 = vpop.f32.mrf.mxu2 }
 0x572   :  { %v1763_v34 = vpop.eup %1762  ;;  %v1082_v35 = vmax.f32 %v1080_v33, %v1081_v36 }
 0x573   :  { %v1012_v37 = vpack.c.bf16 %v1763_v34, %v1763_v34  ;;  %v1005_v3 = vsel %vm290_vm5, %v1763_v34, 0.0 }
 0x574   :  { %v1083_v38 = vrot.slane %v1082_v35, 1  ;;  %v1006_v19 = vrot.slane %v1005_v3, 4 }
 0x575   :  { %v1017_v40 = vsel %vm330_vm6, %v1012_v37, 0 }
 0x576   :  { %v1084_v42 = vmax.f32 %v1082_v35, %v1083_v38  ;;  %1026 = vmatpush.bf16.msra.mxu3 %v1017_v40  ;;  %v1007_v26 = vadd.f32 %v1006_v19, %v1005_v3 }
 0x578   :  { %v1085_v44 = vsub.f32 %v1075_v31, %v1084_v42  ;;  %v1157_v45 = vpop.f32.mrf.mxu2  ;;  %v1008_v29 = vrot.slane %v1007_v26, 2 }
 0x579   :  { %v1158_v46 = vadd.f32 %v1157_v45, %v1125_v41  ;;  %1636 = vmatmul.msk.bf16.vlgmr.msra.gmra.mxu3 %vm290_vm5, %v957_v43 }
 0x57a   :  { %v1086_v47 = vmul.f32 1.442695, %v1085_v44  ;;  %v1009_v4 = vadd.f32 %v1008_v29, %v1007_v26 }
 0x57b   :  { %v1161_v48 = vsel %vm290_vm5, %v1158_v46, -inf }
 0x57c   :  { %1764 = vpow2.f32 %v1086_v47  ;;  %v1162_v49 = vrot.slane %v1161_v48, 4  ;;  %v1010_v33 = vrot.slane %v1009_v4, 1 }
 0x57e   :  { %v1163_v51 = vmax.f32 %v1161_v48, %v1162_v49  ;;  %v1011_v39 = vadd.f32 %v1010_v33, %v1009_v4 }
 0x580   :  { %v1164_v52 = vrot.slane %v1163_v51, 2  ;;  %v1159_v53 = vpop.f32.mrf.mxu2 }
 0x582   :  { %v1765_v54 = vpop.eup %1764  ;;  %v1165_v50 = vmax.f32 %v1163_v51, %v1164_v52 }
 0x583   :  { %v1095_v56 = vpack.c.bf16 %v1765_v54, %v1765_v54  ;;  %v1088_v30 = vsel %vm290_vm5, %v1765_v54, 0.0 }
 0x584   :  { %v1166_v57 = vrot.slane %v1165_v50, 1  ;;  %v1089_v28 = vrot.slane %v1088_v30, 4 }
 0x585   :  { %v1100_v58 = vsel %vm330_vm6, %v1095_v56, 0 }
 0x586   :  { %v1167_v60 = vmax.f32 %v1165_v50, %v1166_v57  ;;  %1109 = vmatpush.bf16.msrb.mxu3 %v1100_v58  ;;  %v1090_v36 = vadd.f32 %v1089_v28, %v1088_v30 }
 0x588   :  { %v1168_v61 = vsub.f32 %v1158_v46, %v1167_v60  ;;  %v1091_v34 = vrot.slane %v1090_v36, 2 }
 0x589   :  { %1639 = vmatmul.msk.bf16.vlgmr.msrb.gmra.mxu3 %vm290_vm5, %v1040_v59 }
 0x58a   :  { %v1169_v62 = vmul.f32 1.442695, %v1168_v61  ;;  %v1092_v37 = vadd.f32 %v1091_v34, %v1090_v36 }
 0x58c   :  { %1766 = vpow2.f32 %v1169_v62  ;;  %v1093_v43 = vrot.slane %v1092_v37, 1 }
 0x58d   :  { %1768 = vrcp.f32 %v928_v27 }
 0x58e   :  { %1770 = vrcp.f32 %v1011_v39  ;;  %v1094_v45 = vadd.f32 %v1093_v43, %v1092_v37 }
 0x590   :  { %1772 = vrcp.f32 %v1094_v45  ;;  %v1733_v45 = vld [vmem:[%s2285_s8] ss:$0 sm:$0xff] }
 0x592   :  { %v1767_v63 = vpop.eup %1766 }
 0x593   :  { %v1178_v0 = vpack.c.bf16 %v1767_v63, %v1767_v63  ;;  %v1769_v31 = vpop.eup %1768  ;;  %v1171_v38 = vsel %vm290_vm5, %v1767_v63, 0.0 }
 0x594   :  { %v1771_v1 = vpop.eup %1770  ;;  %v1172_v42 = vrot.slane %v1171_v38, 4 }
 0x595   :  { %v1183_v5 = vsel %vm330_vm6, %v1178_v0, 0 }
 0x596   :  { %1192 = vmatpush.bf16.msra.mxu3 %v1183_v5  ;;  %v1173_v44 = vadd.f32 %v1172_v42, %v1171_v38  ;;  %v1773_v53 = vpop.eup %1772  ;;  %v1708_v5 = vld [vmem:[%s2282_s5] sm:$0xff] }
 0x597   :  { %1253 = vmatpush.bf16.msra.mxu0 %v1708_v5  ;;  %v1717_v5 = vld [vmem:[%s2289_s12 + $0x28] sm:$0xff] }
 0x598   :  { %v1174_v49 = vrot.slane %v1173_v44, 2 }
 0x599   :  { %1642 = vmatmul.msk.bf16.vlgmr.msra.gmra.mxu3 %vm290_vm5, %v1123_v6 }
 0x59a   :  { %v1175_v52 = vadd.f32 %v1174_v49, %v1173_v44 }
 0x59c   :  { %v1176_v55 = vrot.slane %v1175_v52, 1 }
 0x59e   :  { %v1177_v56 = vadd.f32 %v1176_v55, %v1175_v52  ;;  %v1736_v55 = vld [vmem:[%s2288_s11] ss:$0 sm:$0xff] }
 0x5a0   :  { %1774 = vrcp.f32 %v1177_v56 }
 0x5a6   :  { %v1775_v58 = vpop.eup %1774 }
 0x5c2   :  { %v693_v8 = vpop.f32.mrf.mxu3 }
 0x5c3   :  { %v694_v9 = vadd.f32 %v1732_v7, %v693_v8 }
 0x5c5   :  { %697 = vst.msk [vmem:[#allocation4] sm:$0xff] %vm67_vm0, %v694_v9 }
 0x5ca   :  { %v695_v12 = vpop.f32.mrf.mxu3 }
 0x5cc   :  { %v1262_v14 = vld [vmem:[#allocation4] sm:$0xff] }
 0x5cd   :  { %v1265_v15 = vmul.f32 %v1264_v10, %v1262_v14  ;;  %v1735_v14 = vld [vmem:[%s2283_s6] ss:$0 sm:$0xff]  ;;  %s1537_s6 = sshll.u32 %s1834_s0, 4  ;;  %s1538_s6 = int_to_ptr.vmem [resolvable:$true] %s1537_s6 }
 0x5cf   :  { %v2172_v18 = vadd.f32 %v1788_v17, %v1265_v15 }
 0x5d1   :  { %v1269_v20 = vsel %vm67_vm0, %v2172_v18, 0.0 }
 0x5d2   :  { %1270 = vadd.xlane.f32.xlu2 %v1269_v20 }
 0x5ec   :  { %v945_v24 = vpop.f32.mrf.mxu3 }
 0x5ed   :  { %v950_v32 = vmul.f32 %v1769_v31, %v945_v24  ;;  %v1711_v31 = vld [vmem:[%s2287_s10 + $0x8] sm:$0xff] }
 0x5ee   :  { %1355 = vmatpush.bf16.msrb.mxu2 %v1711_v31 }
 0x5ef   :  { %951 = vst.msk [vmem:[#allocation3] sm:$0xff] %vm290_vm5, %v950_v32  ;;  %v1710_v32 = vld [vmem:[%s2287_s10] sm:$0xff]  ;;  %s1539_s10 = sshll.u32 %s2292_s15, 4  ;;  %s1540_s10 = int_to_ptr.hbm [resolvable:$true] %s1539_s10 }
 0x5f2   :  { %1356 = vmatpush.bf16.msrb.mxu2 %v1710_v32 }
 0x5f4   :  { %v947_v35 = vpop.f32.mrf.mxu3 }
 0x5f6   :  { %v1201_v47 = vld [vmem:[#allocation3] sm:$0xff] }
 0x5fc   :  { %v1028_v40 = vpop.f32.mrf.mxu3 }
 0x5fd   :  { %v1033_v41 = vmul.f32 %v1771_v1, %v1028_v40 }
 0x5ff   :  { %1034 = vst.msk [vmem:[#allocation3 + $0x8] sm:$0xff] %vm290_vm5, %v1033_v41 }
 0x604   :  { %v1030_v46 = vpop.f32.mrf.mxu3 }
 0x606   :  { %v1202_v48 = vld [vmem:[#allocation3 + $0x8] sm:$0xff] }
 0x607   :  { %v1205_v51 = vpack.c.bf16 %v1202_v48, %v1201_v47  ;;  %v1734_v48 = vld [vmem:[%s2286_s9] ss:$0 sm:$0xff] }
 0x609   :  { %1215 = vxpose.xlu1.c.b16.start [1/2] (short) (narrow) %v1205_v51, 16 }
 0x60c   :  { %v1111_v54 = vpop.f32.mrf.mxu3 }
 0x60d   :  { %v1116_v50 = vmul.f32 %v1773_v53, %v1111_v54 }
 0x60f   :  { %1117 = vst.msk [vmem:[#allocation3 + $0x10] sm:$0xff] %vm290_vm5, %v1116_v50 }
 0x614   :  { %v1113_v57 = vpop.f32.mrf.mxu3 }
 0x616   :  { %v1203_v62 = vld [vmem:[#allocation3 + $0x10] sm:$0xff] }
 0x61c   :  { %v1194_v59 = vpop.f32.mrf.mxu3 }
 0x61d   :  { %v1199_v60 = vmul.f32 %v1775_v58, %v1194_v59  ;;  %v1719_v59 = vld [vmem:[%s2289_s12 + $0x38] sm:$0xff] }
 0x61e   :  { %1512 = vmatpush.bf16.msrb.mxu3 %v1719_v59 }
 0x61f   :  { %1200 = vst.msk [vmem:[#allocation3 + $0x18] sm:$0xff] %vm290_vm5, %v1199_v60 }
 0x624   :  { %v1196_v61 = vpop.f32.mrf.mxu3 }
 0x626   :  { %v1204_v63 = vld [vmem:[#allocation3 + $0x18] sm:$0xff] }
 0x627   :  { %v1206_v0 = vpack.c.bf16 %v1204_v63, %v1203_v62  ;;  %v1718_v62 = vld [vmem:[%s2289_s12 + $0x30] sm:$0xff] }
 0x628   :  { %1513 = vmatpush.bf16.msrb.mxu3 %v1718_v62 }
 0x629   :  { %1216 = vxpose.xlu1.c.b16.end [2/2] (short) (narrow) %v1206_v0, 16 }
 0x62c   :  { %1514 = vmatpush.bf16.msrb.mxu3 %v1717_v5 }
 0x645   :  { %v1271_v6 = vpop.xlane.xlu2 %1270 }
 0x646   :  { %v1275_v7 = vmul.f32 %v1271_v6, %v1938_v11 }
 0x648   :  { %v1277_v8 = vsub.f32 %v2172_v18, %v1275_v7 }
 0x64a   :  { %v1279_v9 = vmul.f32 %v1277_v8, %v1277_v8 }
 0x64c   :  { %v1281_v12 = vsel %vm67_vm0, %v1279_v9, 0.0 }
 0x689   :  { %1282 = vadd.xlane.f32.xlu1 %v1281_v12 }
 0x6c5   :  { %v1223_v13 = vpop.trf.xlu1 }
 0x6c6   :  { %1651 = vmatmul.msk.bf16.vlgmr.msra.gmra.mxu0 %vm67_vm0, %v1223_v13 }
 0x743   :  { %v1255_v15 = vpop.f32.mrf.mxu0 }
 0x744   :  { %v1256_v16 = vadd.f32 %v1735_v14, %v1255_v15  ;;  %v1715_v15 = vld [vmem:[%s2289_s12 + $0x18] sm:$0xff] }
 0x746   :  { %1259 = vst.msk [vmem:[#allocation4 + $0x8] sm:$0xff] %vm67_vm0, %v1256_v16 }
 0x74b   :  { %v1257_v17 = vpop.f32.mrf.mxu0 }
 0x74d   :  { %v1263_v20 = vld [vmem:[#allocation4 + $0x8] sm:$0xff] }
 0x74e   :  { %v1266_v21 = vmul.f32 %v1264_v10, %v1263_v20  ;;  %v1283_v10 = vpop.xlane.xlu1 %1282 }
 0x74f   :  { %v1287_v4 = vmul.f32 %v1283_v10, %v1938_v11  ;;  %v1713_v10 = vld [vmem:[%s2289_s12 + $0x8] sm:$0xff] }
 0x750   :  { %v2202_v23 = vadd.f32 %v1789_v22, %v1266_v21  ;;  %v1714_v22 = vld [vmem:[%s2289_s12 + $0x10] sm:$0xff] }
 0x751   :  { %v1289_v30 = vadd.f32 1e-05, %v1287_v4 }
 0x752   :  { %v1272_v3 = vsel %vm67_vm0, %v2202_v23, 0.0 }
 0x753   :  { %1273 = vadd.xlane.f32.xlu0 %v1272_v3  ;;  %1776 = vrsqrt.f32 %v1289_v30  ;;  %vm1297_vm11 = vweird.f32 %v1289_v30 }
 0x759   :  { %v1777_v24 = vpop.eup %1776 }
 0x75a   :  { %v1292_v28 = vmul.f32 %v1777_v24, %v1289_v30  ;;  %vm1298_vm10 = vweird.f32 %v1777_v24 }
 0x75b   :  { %vm1299_vm12 = vmor %vm1297_vm11, %vm1298_vm10 }
 0x75c   :  { %v1293_v33 = vmul.f32 %v1777_v24, %v1292_v28 }
 0x75e   :  { %v1294_v34 = vmul.f32 0.5, %v1293_v33 }
 0x760   :  { %v1295_v37 = vsub.f32 1.5, %v1294_v34 }
 0x762   :  { %v1296_v1 = vmul.f32 %v1777_v24, %v1295_v37 }
 0x764   :  { %v1300_v42 = vsel %vm1299_vm12, %v1777_v24, %v1296_v1 }
 0x7c6   :  { %v1274_v19 = vpop.xlane.xlu0 %1273 }
 0x7c7   :  { %v1276_v25 = vmul.f32 %v1274_v19, %v1938_v11 }
 0x7c9   :  { %v1278_v26 = vsub.f32 %v2202_v23, %v1276_v25 }
 0x7cb   :  { %v1280_v27 = vmul.f32 %v1278_v26, %v1278_v26 }
 0x7cd   :  { %v1284_v29 = vsel %vm67_vm0, %v1280_v27, 0.0 }
 0x7ce   :  { %1285 = vadd.xlane.f32.xlu2 %v1284_v29 }
 0x841   :  { %v1286_v36 = vpop.xlane.xlu2 %1285 }
 0x842   :  { %v1288_v39 = vmul.f32 %v1286_v36, %v1938_v11  ;;  %v1311_v11 = vmul.f32 %v1300_v42, %v1277_v8  ;;  %v1716_v8 = vld [vmem:[%s2289_s12 + $0x20] sm:$0xff] }
 0x843   :  { %1515 = vmatpush.bf16.msrb.mxu3 %v1716_v8  ;;  %v1712_v36 = vld [vmem:[%s2289_s12] sm:$0xff]  ;;  %s1652_s12 = sld [smem:[#allocation5 + $0x1]] }
 0x844   :  { %v1290_v35 = vadd.f32 1e-05, %v1288_v39  ;;  %v1317_v49 = vmul.f32 %v1733_v45, %v1311_v11 }
 0x846   :  { %1778 = vrsqrt.f32 %v1290_v35  ;;  %vm1307_vm14 = vweird.f32 %v1290_v35  ;;  %v1323_v53 = vadd.f32 %v1734_v48, %v1317_v49 }
 0x847   :  { %1516 = vmatpush.bf16.msrb.mxu3 %v1715_v15 }
 0x84b   :  { %1517 = vmatpush.bf16.msrb.mxu3 %v1714_v22  ;;  %v1737_v22 = vld [vmem:[%s2290_s13] ss:$0 sm:$0xff]  ;;  %s1835_s13 = smov 128  }
 0x84c   :  { %v1779_v38 = vpop.eup %1778 }
 0x84d   :  { %v1302_v40 = vmul.f32 %v1779_v38, %v1290_v35  ;;  %vm1308_vm13 = vweird.f32 %v1779_v38 }
 0x84e   :  { %vm1309_vm15 = vmor %vm1307_vm14, %vm1308_vm13 }
 0x84f   :  { %v1303_v41 = vmul.f32 %v1779_v38, %v1302_v40  ;;  %1518 = vmatpush.bf16.msrb.mxu3 %v1713_v10 }
 0x851   :  { %v1304_v43 = vmul.f32 0.5, %v1303_v41 }
 0x853   :  { %v1305_v44 = vsub.f32 1.5, %v1304_v43  ;;  %1519 = vmatpush.bf16.msrb.mxu3 %v1712_v36 }
 0x855   :  { %v1306_v46 = vmul.f32 %v1779_v38, %v1305_v44 }
 0x857   :  { %v1310_v47 = vsel %vm1309_vm15, %v1779_v38, %v1306_v46 }
 0x858   :  { %v1312_v51 = vmul.f32 %v1310_v47, %v1278_v26 }
 0x85a   :  { %v1318_v52 = vmul.f32 %v1733_v45, %v1312_v51 }
 0x85c   :  { %v1324_v54 = vadd.f32 %v1734_v48, %v1318_v52 }
 0x85e   :  { %v1325_v50 = vpack.c.bf16 %v1324_v54, %v1323_v53 }
 0x860   :  { %1661 = vmatmul.msk.bf16.vlgmr.msrb.gmra.mxu2 %vm67_vm0, %v1325_v50 }
 0x8e3   :  { %v1358_v56 = vpop.f32.mrf.mxu2 }
 0x8e4   :  { %v2227_v57 = vadd.f32 %v1736_v55, %v1358_v56 }
 0x8e6   :  { %v2230_v58 = vmul.f32 0.70710677, %v2227_v57  ;;  %v1437_v15 = vmul.f32 0.5, %v2227_v57 }
 0x8e8   :  { %v1369_v60 = vand.u32 2147483647, %v2230_v58  ;;  %vm1365_vm9 = vcmp.ge.f32.partialorder %v2230_v58, 0.0 }
 0x8ea   :  { %v1371_v61 = vmul.f32 0.3275911, %v1369_v60  ;;  %v1423_v30 = vsub.f32 0.0, %v1369_v60 }
 0x8eb   :  { %v1360_v63 = vpop.f32.mrf.mxu2 }
 0x8ec   :  { %v1373_v0 = vadd.f32 1.0, %v1371_v61  ;;  %v2239_v2 = vadd.f32 %v1736_v55, %v1360_v63  ;;  %v1425_v35 = vmul.f32 %v1423_v30, %v1369_v60 }
 0x8ee   :  { %1780 = vrcp.f32 %v1373_v0  ;;  %v2245_v6 = vmul.f32 0.70710677, %v2239_v2  ;;  %v1386_v17 = vand.u32 2147483648, %v1373_v0  ;;  %v1384_v21 = vand.u32 2147483647, %v1373_v0 }
 0x8ef   :  { %vm1380_vm2 = vweird.f32 %v1373_v0  ;;  %v1427_v41 = vmul.f32 1.442695, %v1425_v35 }
 0x8f0   :  { %v1370_v7 = vand.u32 2147483647, %v2245_v6  ;;  %v1387_v19 = vor.u32 1.1754944e-38, %v1386_v17  ;;  %vm1385_vm4 = vcmp.eq.f32.partialorder %v1384_v21, 8.507059e+37  ;;  %vm1366_vm10 = vcmp.ge.f32.partialorder %v2245_v6, 0.0 }
 0x8f2   :  { %v1372_v9 = vmul.f32 0.3275911, %v1370_v7  ;;  %v1424_v43 = vsub.f32 0.0, %v1370_v7 }
 0x8f4   :  { %v1781_v12 = vpop.eup %1780  ;;  %v1374_v14 = vadd.f32 1.0, %v1372_v9  ;;  %v1426_v47 = vmul.f32 %v1424_v43, %v1370_v7 }
 0x8f5   :  { %v1376_v13 = vmul.f32 %v1781_v12, %v1373_v0  ;;  %vm1381_vm1 = vweird.f32 %v1781_v12  ;;  %v1833_v0 = vmov -1.0  }
 0x8f6   :  { %1782 = vrcp.f32 %v1374_v14  ;;  %vm1382_vm3 = vmor %vm1380_vm2, %vm1381_vm1  ;;  %v1401_v32 = vand.u32 2147483648, %v1374_v14  ;;  %v1399_v33 = vand.u32 2147483647, %v1374_v14  ;;  %vm1395_vm6 = vweird.f32 %v1374_v14 }
 0x8f7   :  { %v1377_v16 = vsub.f32 1.0, %v1376_v13  ;;  %1784 = vpow2.f32 %v1427_v41  ;;  %v1429_v53 = vmul.f32 1.442695, %v1426_v47  ;;  %v1367_v5 = vsel %vm1365_vm9, 1.0, %v1833_v0 }
 0x8f8   :  { %v1402_v38 = vor.u32 1.1754944e-38, %v1401_v32  ;;  %vm1400_vm8 = vcmp.eq.f32.partialorder %v1399_v33, 8.507059e+37 }
 0x8f9   :  { %v1378_v20 = vmul.f32 %v1781_v12, %v1377_v16  ;;  %1786 = vpow2.f32 %v1429_v53  ;;  %v1438_v16 = vmul.f32 0.5, %v2239_v2 }
 0x8fb   :  { %v1379_v3 = vadd.f32 %v1781_v12, %v1378_v20 }
 0x8fc   :  { %v1783_v25 = vpop.eup %1782 }
 0x8fd   :  { %v1383_v26 = vsel %vm1382_vm3, %v1781_v12, %v1379_v3  ;;  %v1391_v29 = vmul.f32 %v1783_v25, %v1374_v14  ;;  %vm1396_vm5 = vweird.f32 %v1783_v25  ;;  %v1785_v50 = vpop.eup %1784  ;;  %v1368_v12 = vsel %vm1366_vm10, 1.0, %v1833_v0 }
 0x8fe   :  { %v1388_v27 = vsel %vm1385_vm4, %v1387_v19, %v1383_v26  ;;  %vm1397_vm7 = vmor %vm1395_vm6, %vm1396_vm5  ;;  %v1526_v3 = vstv %s1652_s12 }
 0x8ff   :  { %v1405_v4 = vmul.f32 1.0614054, %v1388_v27  ;;  %v1392_v31 = vsub.f32 1.0, %v1391_v29  ;;  %v1787_v63 = vpop.eup %1786 }
 0x901   :  { %v1407_v24 = vadd.f32 -1.4531521, %v1405_v4  ;;  %v1393_v28 = vmul.f32 %v1783_v25, %v1392_v31 }
 0x903   :  { %v1409_v39 = vmul.f32 %v1407_v24, %v1388_v27  ;;  %v1394_v34 = vadd.f32 %v1783_v25, %v1393_v28 }
 0x905   :  { %v1411_v37 = vadd.f32 1.4214138, %v1409_v39  ;;  %v1398_v1 = vsel %vm1397_vm7, %v1783_v25, %v1394_v34 }
 0x906   :  { %v1403_v42 = vsel %vm1400_vm8, %v1402_v38, %v1398_v1 }
 0x907   :  { %v1413_v40 = vmul.f32 %v1411_v37, %v1388_v27  ;;  %v1406_v44 = vmul.f32 1.0614054, %v1403_v42 }
 0x909   :  { %v1415_v45 = vadd.f32 -0.28449672, %v1413_v40  ;;  %v1408_v11 = vadd.f32 -1.4531521, %v1406_v44 }
 0x90b   :  { %v1417_v46 = vmul.f32 %v1415_v45, %v1388_v27  ;;  %v1410_v48 = vmul.f32 %v1408_v11, %v1403_v42 }
 0x90d   :  { %v1419_v49 = vadd.f32 0.2548296, %v1417_v46  ;;  %v1412_v51 = vadd.f32 1.4214138, %v1410_v48 }
 0x90f   :  { %v1421_v52 = vmul.f32 %v1419_v49, %v1388_v27  ;;  %v1414_v54 = vmul.f32 %v1412_v51, %v1403_v42 }
 0x911   :  { %v1431_v55 = vmul.f32 %v1785_v50, %v1421_v52  ;;  %v1416_v56 = vadd.f32 -0.28449672, %v1414_v54 }
 0x913   :  { %v1418_v59 = vmul.f32 %v1416_v56, %v1403_v42  ;;  %v1433_v60 = vsub.f32 1.0, %v1431_v55 }
 0x915   :  { %v1420_v61 = vadd.f32 0.2548296, %v1418_v59  ;;  %v1435_v7 = vmul.f32 %v1433_v60, %v1367_v5 }
 0x917   :  { %v1422_v62 = vmul.f32 %v1420_v61, %v1403_v42  ;;  %v1439_v13 = vadd.f32 1.0, %v1435_v7 }
 0x919   :  { %v1432_v8 = vmul.f32 %v1787_v63, %v1422_v62  ;;  %v1441_v58 = vmul.f32 %v1439_v13, %v1437_v15 }
 0x91b   :  { %v1434_v9 = vsub.f32 1.0, %v1432_v8 }
 0x91d   :  { %v1436_v14 = vmul.f32 %v1434_v9, %v1368_v12 }
 0x91f   :  { %v1440_v17 = vadd.f32 1.0, %v1436_v14 }
 0x921   :  { %v1442_v20 = vmul.f32 %v1440_v17, %v1438_v16 }
 0x923   :  { %v1443_v21 = vpack.c.bf16 %v1442_v20, %v1441_v58 }
 0x925   :  { %1520 = vmatmul.bf16.vlgmr.msrb.gmra.mxu3 %v1443_v21 }
 0x9a8   :  { %v1521_v6 = vpop.f32.mrf.mxu3 }
 0x9a9   :  { %v1522_v19 = vadd.f32 %v1737_v22, %v1521_v6 }
 0x9ab   :  { %v1527_v25 = vmul.f32 %v1526_v3, %v1522_v19 }
 0x9ad   :  { %v1529_v26 = vadd.f32 %v1527_v25, %v2172_v18 }
 0x9af   :  { %1531 = vst.msk [vmem:[#allocation8] sm:$0xff] %vm67_vm0, %v1529_v26 }
 0x9b0   :  { %v1523_v57 = vpop.f32.mrf.mxu3 }
 0x9b1   :  { %v1524_v2 = vadd.f32 %v1737_v22, %v1523_v57 }
 0x9b3   :  { %v1528_v27 = vmul.f32 %v1526_v3, %v1524_v2 }
 0x9b5   :  { %v1530_v29 = vadd.f32 %v1528_v27, %v2202_v23 }
 0x9b7   :  { %1532 = vst.msk [vmem:[#allocation8 + $0x8] sm:$0xff] %vm67_vm0, %v1530_v29 }
 0x9b8   :  { %1545 = dma.vmem_to_hbm [thread:$0]  %s1538_s6, 256, %s1540_s10, [#allocation6], %s1835_s13, %s1835_s13, %s1836_s1  }
 0x9b9   :  { %1828 = dma.done.wait [#allocation6], 256  }
 0x9ba   :  { %1829 = vsyncadd [#allocation6], 4294967040 }
 0x9bb   :  { %1550 = vsyncpa [#allocation6], 1 }
 0x9bc   :  { %1551 = vsyncpa [#allocation7], 1 }

</bundles_post_ra>
